<compile_context>
chip_gen: v6e
topology: v6e:2x2x1
jax: 0.10.0
libtpu: 0.0.40
codegen_flags: <defaults>
</compile_context>

<pallas_src>
import functools

import jax
import jax.numpy as jnp
from jax import lax
from jax.experimental import pallas as pl
from jax.experimental.pallas import tpu as pltpu


def _round_up(x, m):
    return ((x + m - 1) // m) * m


def _grad_loss_kernel(pred_ref, targ_ref, mask_ref,
                      pred_nx_ref, targ_nx_ref, mask_nx_ref,
                      out_ref, *, scales, tile_h, w_pad, h_pad, out_rows):
    """Fused multi-scale masked gradient loss on one (TILE_H, W_pad) tile.

    Writes an (out_rows, 128) f32 tile where row 2*s holds the scale-s loss
    partial sum (broadcast over lanes) and row 2*s+1 holds the scale-s mask
    partial sum.
    """
    f32 = jnp.float32

    m = mask_ref[0].astype(f32)                                   # (T, W)
    diff = m * (pred_ref[0].astype(f32) - targ_ref[0].astype(f32))

    # First row of the *next* H tile (absolute row row0 + tile_h).  Because
    # tile_h is a multiple of every step, this is the partner of the single
    # y-gradient pair per scale that crosses the tile boundary.
    m_nx = mask_nx_ref[0, 0:1, :].astype(f32)                     # (1, W)
    d_nx = m_nx * (pred_nx_ref[0, 0:1, :].astype(f32)
                   - targ_nx_ref[0, 0:1, :].astype(f32))

    h_loc = lax.broadcasted_iota(jnp.int32, (tile_h, w_pad), 0)
    w_loc = lax.broadcasted_iota(jnp.int32, (tile_h, w_pad), 1)

    row0 = pl.program_id(1) * tile_h
    # 1 iff the first row of the next tile exists inside the padded image.
    has_next = (row0 + tile_h < h_pad).astype(jnp.int32)

    out_row_idx = lax.broadcasted_iota(jnp.int32, (out_rows, 128), 0)
    out_tile = jnp.zeros((out_rows, 128), f32)

    for s in range(scales):
        step = 1 << s

        # Sub-sampling grid of this scale (absolute index % step == 0; row0 is
        # a multiple of step, so local indices suffice).
        on_h = (h_loc & (step - 1)) == 0
        on_w = (w_loc & (step - 1)) == 0
        on_grid = jnp.logical_and(on_h, on_w)

        # ---- x direction (lane axis).  roll by (w_pad - step) == roll by
        # -step, i.e. shifted[w] = x[(w + step) mod w_pad]; the wrap-around is
        # killed by the (w + step < w_pad) bound.  Pairs reaching into the
        # zero-padded region are killed by the zero mask.
        d_x = pltpu.roll(diff, shift=w_pad - step, axis=1)
        m_x = pltpu.roll(m, shift=w_pad - step, axis=1)
        ok_x = jnp.logical_and(on_grid, w_loc + step < w_pad)
        gx = jnp.where(ok_x, (m_x * m) * jnp.abs(d_x - diff), 0.0)

        # ---- y direction (sublane axis): roll within the tile, and patch the
        # wrapped rows with the next tile's first row (halo).
        if step < tile_h:
            d_roll = pltpu.roll(diff, shift=tile_h - step, axis=0)
            m_roll = pltpu.roll(m, shift=tile_h - step, axis=0)
        else:
            d_roll = diff       # unused below: in_tile is all-False
            m_roll = m
        in_tile = h_loc + step < tile_h
        d_y = jnp.where(in_tile, d_roll, d_nx)
        m_y = jnp.where(in_tile, m_roll, m_nx)
        # Rows whose partner lies inside the tile, plus (iff a next tile
        # exists) the single on-grid row pairing with the next tile's row 0.
        y_limit = tile_h + step * has_next
        ok_y = jnp.logical_and(on_grid, h_loc + step < y_limit)
        gy = jnp.where(ok_y, (m_y * m) * jnp.abs(d_y - diff), 0.0)

        loss_s = jnp.sum(gx + gy)
        msum_s = jnp.sum(jnp.where(on_grid, m, 0.0))

        # Pack the two scalars into dedicated rows of the aligned output tile.
        out_tile = out_tile + jnp.where(out_row_idx == 2 * s, loss_s, 0.0)
        out_tile = out_tile + jnp.where(out_row_idx == 2 * s + 1, msum_s, 0.0)

    out_ref[0, 0] = out_tile


def gradient_loss_pallas(prediction, target, mask, scales=4, tile_h=None):
    """Equivalent of GradientLoss(scales, reduction='batch-based').forward."""
    assert prediction.ndim == 3, "expected (batch, height, width) inputs"
    B, H, W = prediction.shape
    max_step = 1 << (scales - 1)
    align = max(8, max_step)

    w_pad = _round_up(W, 128)

    if tile_h is None:
        # ~512 KiB per f32 input block: 3 double-buffered inputs (+halos,
        # +temporaries) stay far below the smallest (v5e, 16 MiB) scoped VMEM
        # default while the blocks are large enough to sit near HBM roofline.
        budget_rows = max(align, ((512 * 1024) // (w_pad * 4)) // align * align)
        h_aligned = _round_up(H, align)
        budget_rows = min(budget_rows, h_aligned)
        num_tiles = -(-h_aligned // budget_rows)
        tile_h = _round_up(-(-h_aligned // num_tiles), align)
    else:
        assert tile_h % align == 0 and tile_h >= align, (
            "tile_h must be a positive multiple of max(8, 2**(scales-1))")
    h_pad = _round_up(H, tile_h)
    ht = h_pad // tile_h

    pad_h = h_pad - H
    pad_w = w_pad - W

    def _pad(x):
        if pad_h or pad_w:
            # Zero padding is neutral: padded mask==0 zeroes every gradient
            # term / mask-sum contribution that touches the padded region.
            x = jnp.pad(x, ((0, 0), (0, pad_h), (0, pad_w)))
        return x

    p = _pad(prediction)
    t = _pad(target)
    m = _pad(mask)

    out_rows = max(8, _round_up(2 * scales, 8))

    halo_blocks_per_tile = tile_h // 8
    last_halo_block = h_pad // 8 - 1

    def main_map(b, h):
        return (b, h, 0)

    def halo_map(b, h):
        # First 8 rows of the next H tile (clamped for the last tile; those
        # contributions are masked out via `has_next` inside the kernel).
        return (b, jnp.minimum((h + 1) * halo_blocks_per_tile,
                               last_halo_block), 0)

    kernel = functools.partial(
        _grad_loss_kernel, scales=scales, tile_h=tile_h, w_pad=w_pad,
        h_pad=h_pad, out_rows=out_rows)

    in_bytes = (prediction.dtype.itemsize + target.dtype.itemsize
                + mask.dtype.itemsize)
    cost = pl.CostEstimate(
        flops=int(22 * scales * B * h_pad * w_pad),
        transcendentals=0,
        bytes_accessed=int(B * h_pad * w_pad * in_bytes
                           + B * ht * (8 * w_pad * in_bytes
                                       + out_rows * 128 * 4)))

    partial_sums = pl.pallas_call(
        kernel,
        out_shape=jax.ShapeDtypeStruct((B, ht, out_rows, 128), jnp.float32),
        grid=(B, ht),
        in_specs=[
            pl.BlockSpec((1, tile_h, w_pad), main_map),   # prediction
            pl.BlockSpec((1, tile_h, w_pad), main_map),   # target
            pl.BlockSpec((1, tile_h, w_pad), main_map),   # mask
            pl.BlockSpec((1, 8, w_pad), halo_map),        # prediction halo
            pl.BlockSpec((1, 8, w_pad), halo_map),        # target halo
            pl.BlockSpec((1, 8, w_pad), halo_map),        # mask halo
        ],
        out_specs=pl.BlockSpec((1, 1, out_rows, 128), lambda b, h: (b, h, 0, 0)),
        compiler_params=pltpu.CompilerParams(
            dimension_semantics=("parallel", "parallel")),
        cost_estimate=cost,
    )(p, t, m, p, t, m)

    # Tiny final reduction + per-scale normalization in plain JAX.
    per_tile = partial_sums[:, :, : 2 * scales, 0]        # (B, ht, 2*scales)
    sums = jnp.sum(per_tile, axis=(0, 1))                 # (2*scales,)
    loss_sums = sums[0::2]
    mask_sums = sums[1::2]
    denom = jnp.where(mask_sums != 0, mask_sums, jnp.float32(1.0))
    per_scale = jnp.where(mask_sums != 0, loss_sums / denom, jnp.float32(0.0))
    return jnp.sum(per_scale)


def _gradient_loss_ref(prediction, target, mask, scales=4):
    """Pure-JAX reference mirroring the PyTorch module (batch-based)."""
    total = jnp.float32(0.0)
    for scale in range(scales):
        step = 2 ** scale
        p = prediction[:, ::step, ::step]
        t = target[:, ::step, ::step]
        m = mask[:, ::step, ::step]
        diff = m * (p - t)
        gx = jnp.abs(diff[:, :, 1:] - diff[:, :, :-1]) * (m[:, :, 1:] * m[:, :, :-1])
        gy = jnp.abs(diff[:, 1:, :] - diff[:, :-1, :]) * (m[:, 1:, :] * m[:, :-1, :])
        image_loss = jnp.sum(gx, axis=(1, 2)) + jnp.sum(gy, axis=(1, 2))
        divisor = jnp.sum(m)
        safe = jnp.where(divisor != 0, divisor, jnp.float32(1.0))
        total = total + jnp.where(divisor != 0,
                                  jnp.sum(image_loss) / safe, jnp.float32(0.0))
    return total


if __name__ == "__main__":
    # Case 1: small shapes consistent with the module's 3-D (B, H, W) inputs.
    key = jax.random.PRNGKey(0)
    kp, kt, km = jax.random.split(key, 3)
    B, H, W = 2, 16, 16
    prediction = jax.random.normal(kp, (B, H, W), dtype=jnp.float32)
    target = jax.random.normal(kt, (B, H, W), dtype=jnp.float32)
    mask = (jax.random.uniform(km, (B, H, W)) > 0.3).astype(jnp.float32)

    out = jax.block_until_ready(
        gradient_loss_pallas(prediction, target, mask, scales=4))
    ref = _gradient_loss_ref(prediction, target, mask, scales=4)
    assert jnp.allclose(out, ref, rtol=1e-5, atol=1e-5), (out, ref)

    # Case 2: non-aligned H/W with a forced small H tile, exercising the
    # multi-tile grid, the cross-tile y-gradient halo path and zero padding.
    kp2, kt2, km2 = jax.random.split(jax.random.PRNGKey(1), 3)
    B2, H2, W2 = 2, 20, 40
    prediction2 = jax.random.normal(kp2, (B2, H2, W2), dtype=jnp.float32)
    target2 = jax.random.normal(kt2, (B2, H2, W2), dtype=jnp.float32)
    mask2 = (jax.random.uniform(km2, (B2, H2, W2)) > 0.3).astype(jnp.float32)

    out2 = jax.block_until_ready(
        gradient_loss_pallas(prediction2, target2, mask2, scales=4, tile_h=8))
    ref2 = _gradient_loss_ref(prediction2, target2, mask2, scales=4)
    assert jnp.allclose(out2, ref2, rtol=1e-5, atol=1e-5), (out2, ref2)

    print("KERNEL_OK")
</pallas_src>

<mosaic_0001>
module attributes {stable_mosaic.version = 11 : i64} {
  func.func @_grad_loss_kernel(%arg0: i32, %arg1: i32, %arg2: memref<1x16x128xf32, #tpu.memory_space<vmem>>, %arg3: memref<1x16x128xf32, #tpu.memory_space<vmem>>, %arg4: memref<1x16x128xf32, #tpu.memory_space<vmem>>, %arg5: memref<1x8x128xf32, #tpu.memory_space<vmem>>, %arg6: memref<1x8x128xf32, #tpu.memory_space<vmem>>, %arg7: memref<1x8x128xf32, #tpu.memory_space<vmem>>, %arg8: memref<1x1x8x128xf32, #tpu.memory_space<vmem>>) attributes {dimension_semantics = [#tpu.dimension_semantics<parallel>, #tpu.dimension_semantics<parallel>], iteration_bounds = array<i64: 2, 1>, scalar_prefetch = 0 : i64, scratch_operands = 0 : i64, tpu.core_type = #tpu.core_type<tc>, window_params = [{transform_indices = @transform_0, window_bounds = array<i64: 1, 16, 128>}, {transform_indices = @transform_1, window_bounds = array<i64: 1, 16, 128>}, {transform_indices = @transform_2, window_bounds = array<i64: 1, 16, 128>}, {transform_indices = @transform_3, window_bounds = array<i64: 1, 8, 128>}, {transform_indices = @transform_4, window_bounds = array<i64: 1, 8, 128>}, {transform_indices = @transform_5, window_bounds = array<i64: 1, 8, 128>}, {transform_indices = @transform_6, window_bounds = array<i64: 1, 1, 8, 128>}]} {
    %c0 = arith.constant 0 : index
    %c0_0 = arith.constant 0 : index
    %c0_1 = arith.constant 0 : index
    %0 = vector.load %arg4[%c0, %c0_0, %c0_1] : memref<1x16x128xf32, #tpu.memory_space<vmem>>, vector<1x16x128xf32>
    %1 = vector.shape_cast %0 : vector<1x16x128xf32> to vector<16x128xf32>
    %c0_2 = arith.constant 0 : index
    %c0_3 = arith.constant 0 : index
    %c0_4 = arith.constant 0 : index
    %2 = vector.load %arg2[%c0_2, %c0_3, %c0_4] : memref<1x16x128xf32, #tpu.memory_space<vmem>>, vector<1x16x128xf32>
    %3 = vector.shape_cast %2 : vector<1x16x128xf32> to vector<16x128xf32>
    %c0_5 = arith.constant 0 : index
    %c0_6 = arith.constant 0 : index
    %c0_7 = arith.constant 0 : index
    %4 = vector.load %arg3[%c0_5, %c0_6, %c0_7] : memref<1x16x128xf32, #tpu.memory_space<vmem>>, vector<1x16x128xf32>
    %5 = vector.shape_cast %4 : vector<1x16x128xf32> to vector<16x128xf32>
    %6 = arith.subf %3, %5 : vector<16x128xf32>
    %7 = arith.mulf %1, %6 : vector<16x128xf32>
    %c0_8 = arith.constant 0 : index
    %c0_9 = arith.constant 0 : index
    %c0_10 = arith.constant 0 : index
    %8 = vector.load %arg7[%c0_8, %c0_9, %c0_10] : memref<1x8x128xf32, #tpu.memory_space<vmem>>, vector<1x1x128xf32>
    %9 = vector.shape_cast %8 : vector<1x1x128xf32> to vector<1x128xf32>
    %c0_11 = arith.constant 0 : index
    %c0_12 = arith.constant 0 : index
    %c0_13 = arith.constant 0 : index
    %10 = vector.load %arg5[%c0_11, %c0_12, %c0_13] : memref<1x8x128xf32, #tpu.memory_space<vmem>>, vector<1x1x128xf32>
    %11 = vector.shape_cast %10 : vector<1x1x128xf32> to vector<1x128xf32>
    %c0_14 = arith.constant 0 : index
    %c0_15 = arith.constant 0 : index
    %c0_16 = arith.constant 0 : index
    %12 = vector.load %arg6[%c0_14, %c0_15, %c0_16] : memref<1x8x128xf32, #tpu.memory_space<vmem>>, vector<1x1x128xf32>
    %13 = vector.shape_cast %12 : vector<1x1x128xf32> to vector<1x128xf32>
    %14 = arith.subf %11, %13 : vector<1x128xf32>
    %15 = arith.mulf %9, %14 : vector<1x128xf32>
    %16 = tpu.iota {dimensions = array<i32: 0>} : vector<16x128xi32>
    %17 = tpu.iota {dimensions = array<i32: 1>} : vector<16x128xi32>
    %c16_i32 = arith.constant 16 : i32
    %18 = arith.muli %arg1, %c16_i32 : i32
    %c16_i32_17 = arith.constant 16 : i32
    %19 = arith.addi %18, %c16_i32_17 : i32
    %c16_i32_18 = arith.constant 16 : i32
    %20 = arith.cmpi slt, %19, %c16_i32_18 : i32
    %21 = arith.extui %20 : i1 to i32
    %22 = tpu.iota {dimensions = array<i32: 0>} : vector<8x128xi32>
    %cst = arith.constant 0.000000e+00 : f32
    %23 = vector.broadcast %cst : f32 to vector<8x128xf32>
    %c0_i32 = arith.constant 0 : i32
    %24 = vector.broadcast %c0_i32 : i32 to vector<16x128xi32>
    %25 = arith.andi %16, %24 : vector<16x128xi32>
    %c0_i32_19 = arith.constant 0 : i32
    %26 = vector.broadcast %c0_i32_19 : i32 to vector<16x128xi32>
    %27 = arith.cmpi eq, %25, %26 : vector<16x128xi32>
    %c0_i32_20 = arith.constant 0 : i32
    %28 = vector.broadcast %c0_i32_20 : i32 to vector<16x128xi32>
    %29 = arith.andi %17, %28 : vector<16x128xi32>
    %c0_i32_21 = arith.constant 0 : i32
    %30 = vector.broadcast %c0_i32_21 : i32 to vector<16x128xi32>
    %31 = arith.cmpi eq, %29, %30 : vector<16x128xi32>
    %32 = arith.andi %27, %31 : vector<16x128xi1>
    %c127_i32 = arith.constant 127 : i32
    %33 = tpu.dynamic_rotate %7 by %c127_i32 dim 1 : vector<16x128xf32>, i32 -> vector<16x128xf32>
    %c127_i32_22 = arith.constant 127 : i32
    %34 = tpu.dynamic_rotate %1 by %c127_i32_22 dim 1 : vector<16x128xf32>, i32 -> vector<16x128xf32>
    %c1_i32 = arith.constant 1 : i32
    %35 = vector.broadcast %c1_i32 : i32 to vector<16x128xi32>
    %36 = arith.addi %17, %35 : vector<16x128xi32>
    %c128_i32 = arith.constant 128 : i32
    %37 = vector.broadcast %c128_i32 : i32 to vector<16x128xi32>
    %38 = arith.cmpi slt, %36, %37 : vector<16x128xi32>
    %39 = arith.andi %32, %38 : vector<16x128xi1>
    %40 = arith.mulf %34, %1 : vector<16x128xf32>
    %41 = arith.subf %33, %7 : vector<16x128xf32>
    %42 = math.absf %41 : vector<16x128xf32>
    %43 = arith.mulf %40, %42 : vector<16x128xf32>
    %cst_23 = arith.constant 0.000000e+00 : f32
    %44 = vector.broadcast %cst_23 : f32 to vector<16x128xf32>
    %45 = arith.select %39, %43, %44 : vector<16x128xi1>, vector<16x128xf32>
    %c15_i32 = arith.constant 15 : i32
    %46 = tpu.dynamic_rotate %7 by %c15_i32 dim 0 : vector<16x128xf32>, i32 -> vector<16x128xf32>
    %c15_i32_24 = arith.constant 15 : i32
    %47 = tpu.dynamic_rotate %1 by %c15_i32_24 dim 0 : vector<16x128xf32>, i32 -> vector<16x128xf32>
    %c1_i32_25 = arith.constant 1 : i32
    %48 = vector.broadcast %c1_i32_25 : i32 to vector<16x128xi32>
    %49 = arith.addi %16, %48 : vector<16x128xi32>
    %c16_i32_26 = arith.constant 16 : i32
    %50 = vector.broadcast %c16_i32_26 : i32 to vector<16x128xi32>
    %51 = arith.cmpi slt, %49, %50 : vector<16x128xi32>
    %52 = vector.shape_cast %15 : vector<1x128xf32> to vector<1x128xf32>
    %53 = vector.broadcast %52 : vector<1x128xf32> to vector<16x128xf32>
    %54 = arith.select %51, %46, %53 : vector<16x128xi1>, vector<16x128xf32>
    %55 = vector.shape_cast %9 : vector<1x128xf32> to vector<1x128xf32>
    %56 = vector.broadcast %55 : vector<1x128xf32> to vector<16x128xf32>
    %57 = arith.select %51, %47, %56 : vector<16x128xi1>, vector<16x128xf32>
    %c1_i32_27 = arith.constant 1 : i32
    %58 = arith.muli %c1_i32_27, %21 : i32
    %c16_i32_28 = arith.constant 16 : i32
    %59 = arith.addi %c16_i32_28, %58 : i32
    %c1_i32_29 = arith.constant 1 : i32
    %60 = vector.broadcast %c1_i32_29 : i32 to vector<16x128xi32>
    %61 = arith.addi %16, %60 : vector<16x128xi32>
    %62 = vector.broadcast %59 : i32 to vector<16x128xi32>
    %63 = arith.cmpi slt, %61, %62 : vector<16x128xi32>
    %64 = arith.andi %32, %63 : vector<16x128xi1>
    %65 = arith.mulf %57, %1 : vector<16x128xf32>
    %66 = arith.subf %54, %7 : vector<16x128xf32>
    %67 = math.absf %66 : vector<16x128xf32>
    %68 = arith.mulf %65, %67 : vector<16x128xf32>
    %cst_30 = arith.constant 0.000000e+00 : f32
    %69 = vector.broadcast %cst_30 : f32 to vector<16x128xf32>
    %70 = arith.select %64, %68, %69 : vector<16x128xi1>, vector<16x128xf32>
    %71 = arith.addf %45, %70 : vector<16x128xf32>
    %72 = vector.shape_cast %71 : vector<16x128xf32> to vector<1x16x128xf32>
    %cst_31 = arith.constant dense<0.000000e+00> : vector<1xf32>
    %73 = vector.multi_reduction <add>, %72, %cst_31 [1, 2] : vector<1x16x128xf32> to vector<1xf32>
    %74 = vector.shape_cast %73 : vector<1xf32> to vector<1x1x1xf32>
    %75 = vector.extract %74[0, 0, 0] : f32 from vector<1x1x1xf32>
    %cst_32 = arith.constant 0.000000e+00 : f32
    %76 = vector.broadcast %cst_32 : f32 to vector<16x128xf32>
    %77 = arith.select %32, %1, %76 : vector<16x128xi1>, vector<16x128xf32>
    %78 = vector.shape_cast %77 : vector<16x128xf32> to vector<1x16x128xf32>
    %cst_33 = arith.constant dense<0.000000e+00> : vector<1xf32>
    %79 = vector.multi_reduction <add>, %78, %cst_33 [1, 2] : vector<1x16x128xf32> to vector<1xf32>
    %80 = vector.shape_cast %79 : vector<1xf32> to vector<1x1x1xf32>
    %81 = vector.extract %80[0, 0, 0] : f32 from vector<1x1x1xf32>
    %c0_i32_34 = arith.constant 0 : i32
    %82 = vector.broadcast %c0_i32_34 : i32 to vector<8x128xi32>
    %83 = arith.cmpi eq, %22, %82 : vector<8x128xi32>
    %cst_35 = arith.constant 0.000000e+00 : f32
    %84 = vector.broadcast %75 : f32 to vector<8x128xf32>
    %85 = vector.broadcast %cst_35 : f32 to vector<8x128xf32>
    %86 = arith.select %83, %84, %85 : vector<8x128xi1>, vector<8x128xf32>
    %87 = arith.addf %23, %86 : vector<8x128xf32>
    %c1_i32_36 = arith.constant 1 : i32
    %88 = vector.broadcast %c1_i32_36 : i32 to vector<8x128xi32>
    %89 = arith.cmpi eq, %22, %88 : vector<8x128xi32>
    %cst_37 = arith.constant 0.000000e+00 : f32
    %90 = vector.broadcast %81 : f32 to vector<8x128xf32>
    %91 = vector.broadcast %cst_37 : f32 to vector<8x128xf32>
    %92 = arith.select %89, %90, %91 : vector<8x128xi1>, vector<8x128xf32>
    %93 = arith.addf %87, %92 : vector<8x128xf32>
    %c1_i32_38 = arith.constant 1 : i32
    %94 = vector.broadcast %c1_i32_38 : i32 to vector<16x128xi32>
    %95 = arith.andi %16, %94 : vector<16x128xi32>
    %c0_i32_39 = arith.constant 0 : i32
    %96 = vector.broadcast %c0_i32_39 : i32 to vector<16x128xi32>
    %97 = arith.cmpi eq, %95, %96 : vector<16x128xi32>
    %c1_i32_40 = arith.constant 1 : i32
    %98 = vector.broadcast %c1_i32_40 : i32 to vector<16x128xi32>
    %99 = arith.andi %17, %98 : vector<16x128xi32>
    %c0_i32_41 = arith.constant 0 : i32
    %100 = vector.broadcast %c0_i32_41 : i32 to vector<16x128xi32>
    %101 = arith.cmpi eq, %99, %100 : vector<16x128xi32>
    %102 = arith.andi %97, %101 : vector<16x128xi1>
    %c126_i32 = arith.constant 126 : i32
    %103 = tpu.dynamic_rotate %7 by %c126_i32 dim 1 : vector<16x128xf32>, i32 -> vector<16x128xf32>
    %c126_i32_42 = arith.constant 126 : i32
    %104 = tpu.dynamic_rotate %1 by %c126_i32_42 dim 1 : vector<16x128xf32>, i32 -> vector<16x128xf32>
    %c2_i32 = arith.constant 2 : i32
    %105 = vector.broadcast %c2_i32 : i32 to vector<16x128xi32>
    %106 = arith.addi %17, %105 : vector<16x128xi32>
    %c128_i32_43 = arith.constant 128 : i32
    %107 = vector.broadcast %c128_i32_43 : i32 to vector<16x128xi32>
    %108 = arith.cmpi slt, %106, %107 : vector<16x128xi32>
    %109 = arith.andi %102, %108 : vector<16x128xi1>
    %110 = arith.mulf %104, %1 : vector<16x128xf32>
    %111 = arith.subf %103, %7 : vector<16x128xf32>
    %112 = math.absf %111 : vector<16x128xf32>
    %113 = arith.mulf %110, %112 : vector<16x128xf32>
    %cst_44 = arith.constant 0.000000e+00 : f32
    %114 = vector.broadcast %cst_44 : f32 to vector<16x128xf32>
    %115 = arith.select %109, %113, %114 : vector<16x128xi1>, vector<16x128xf32>
    %c14_i32 = arith.constant 14 : i32
    %116 = tpu.dynamic_rotate %7 by %c14_i32 dim 0 : vector<16x128xf32>, i32 -> vector<16x128xf32>
    %c14_i32_45 = arith.constant 14 : i32
    %117 = tpu.dynamic_rotate %1 by %c14_i32_45 dim 0 : vector<16x128xf32>, i32 -> vector<16x128xf32>
    %c2_i32_46 = arith.constant 2 : i32
    %118 = vector.broadcast %c2_i32_46 : i32 to vector<16x128xi32>
    %119 = arith.addi %16, %118 : vector<16x128xi32>
    %c16_i32_47 = arith.constant 16 : i32
    %120 = vector.broadcast %c16_i32_47 : i32 to vector<16x128xi32>
    %121 = arith.cmpi slt, %119, %120 : vector<16x128xi32>
    %122 = vector.shape_cast %15 : vector<1x128xf32> to vector<1x128xf32>
    %123 = vector.broadcast %122 : vector<1x128xf32> to vector<16x128xf32>
    %124 = arith.select %121, %116, %123 : vector<16x128xi1>, vector<16x128xf32>
    %125 = vector.shape_cast %9 : vector<1x128xf32> to vector<1x128xf32>
    %126 = vector.broadcast %125 : vector<1x128xf32> to vector<16x128xf32>
    %127 = arith.select %121, %117, %126 : vector<16x128xi1>, vector<16x128xf32>
    %c2_i32_48 = arith.constant 2 : i32
    %128 = arith.muli %c2_i32_48, %21 : i32
    %c16_i32_49 = arith.constant 16 : i32
    %129 = arith.addi %c16_i32_49, %128 : i32
    %c2_i32_50 = arith.constant 2 : i32
    %130 = vector.broadcast %c2_i32_50 : i32 to vector<16x128xi32>
    %131 = arith.addi %16, %130 : vector<16x128xi32>
    %132 = vector.broadcast %129 : i32 to vector<16x128xi32>
    %133 = arith.cmpi slt, %131, %132 : vector<16x128xi32>
    %134 = arith.andi %102, %133 : vector<16x128xi1>
    %135 = arith.mulf %127, %1 : vector<16x128xf32>
    %136 = arith.subf %124, %7 : vector<16x128xf32>
    %137 = math.absf %136 : vector<16x128xf32>
    %138 = arith.mulf %135, %137 : vector<16x128xf32>
    %cst_51 = arith.constant 0.000000e+00 : f32
    %139 = vector.broadcast %cst_51 : f32 to vector<16x128xf32>
    %140 = arith.select %134, %138, %139 : vector<16x128xi1>, vector<16x128xf32>
    %141 = arith.addf %115, %140 : vector<16x128xf32>
    %142 = vector.shape_cast %141 : vector<16x128xf32> to vector<1x16x128xf32>
    %cst_52 = arith.constant dense<0.000000e+00> : vector<1xf32>
    %143 = vector.multi_reduction <add>, %142, %cst_52 [1, 2] : vector<1x16x128xf32> to vector<1xf32>
    %144 = vector.shape_cast %143 : vector<1xf32> to vector<1x1x1xf32>
    %145 = vector.extract %144[0, 0, 0] : f32 from vector<1x1x1xf32>
    %cst_53 = arith.constant 0.000000e+00 : f32
    %146 = vector.broadcast %cst_53 : f32 to vector<16x128xf32>
    %147 = arith.select %102, %1, %146 : vector<16x128xi1>, vector<16x128xf32>
    %148 = vector.shape_cast %147 : vector<16x128xf32> to vector<1x16x128xf32>
    %cst_54 = arith.constant dense<0.000000e+00> : vector<1xf32>
    %149 = vector.multi_reduction <add>, %148, %cst_54 [1, 2] : vector<1x16x128xf32> to vector<1xf32>
    %150 = vector.shape_cast %149 : vector<1xf32> to vector<1x1x1xf32>
    %151 = vector.extract %150[0, 0, 0] : f32 from vector<1x1x1xf32>
    %c2_i32_55 = arith.constant 2 : i32
    %152 = vector.broadcast %c2_i32_55 : i32 to vector<8x128xi32>
    %153 = arith.cmpi eq, %22, %152 : vector<8x128xi32>
    %cst_56 = arith.constant 0.000000e+00 : f32
    %154 = vector.broadcast %145 : f32 to vector<8x128xf32>
    %155 = vector.broadcast %cst_56 : f32 to vector<8x128xf32>
    %156 = arith.select %153, %154, %155 : vector<8x128xi1>, vector<8x128xf32>
    %157 = arith.addf %93, %156 : vector<8x128xf32>
    %c3_i32 = arith.constant 3 : i32
    %158 = vector.broadcast %c3_i32 : i32 to vector<8x128xi32>
    %159 = arith.cmpi eq, %22, %158 : vector<8x128xi32>
    %cst_57 = arith.constant 0.000000e+00 : f32
    %160 = vector.broadcast %151 : f32 to vector<8x128xf32>
    %161 = vector.broadcast %cst_57 : f32 to vector<8x128xf32>
    %162 = arith.select %159, %160, %161 : vector<8x128xi1>, vector<8x128xf32>
    %163 = arith.addf %157, %162 : vector<8x128xf32>
    %c3_i32_58 = arith.constant 3 : i32
    %164 = vector.broadcast %c3_i32_58 : i32 to vector<16x128xi32>
    %165 = arith.andi %16, %164 : vector<16x128xi32>
    %c0_i32_59 = arith.constant 0 : i32
    %166 = vector.broadcast %c0_i32_59 : i32 to vector<16x128xi32>
    %167 = arith.cmpi eq, %165, %166 : vector<16x128xi32>
    %c3_i32_60 = arith.constant 3 : i32
    %168 = vector.broadcast %c3_i32_60 : i32 to vector<16x128xi32>
    %169 = arith.andi %17, %168 : vector<16x128xi32>
    %c0_i32_61 = arith.constant 0 : i32
    %170 = vector.broadcast %c0_i32_61 : i32 to vector<16x128xi32>
    %171 = arith.cmpi eq, %169, %170 : vector<16x128xi32>
    %172 = arith.andi %167, %171 : vector<16x128xi1>
    %c124_i32 = arith.constant 124 : i32
    %173 = tpu.dynamic_rotate %7 by %c124_i32 dim 1 : vector<16x128xf32>, i32 -> vector<16x128xf32>
    %c124_i32_62 = arith.constant 124 : i32
    %174 = tpu.dynamic_rotate %1 by %c124_i32_62 dim 1 : vector<16x128xf32>, i32 -> vector<16x128xf32>
    %c4_i32 = arith.constant 4 : i32
    %175 = vector.broadcast %c4_i32 : i32 to vector<16x128xi32>
    %176 = arith.addi %17, %175 : vector<16x128xi32>
    %c128_i32_63 = arith.constant 128 : i32
    %177 = vector.broadcast %c128_i32_63 : i32 to vector<16x128xi32>
    %178 = arith.cmpi slt, %176, %177 : vector<16x128xi32>
    %179 = arith.andi %172, %178 : vector<16x128xi1>
    %180 = arith.mulf %174, %1 : vector<16x128xf32>
    %181 = arith.subf %173, %7 : vector<16x128xf32>
    %182 = math.absf %181 : vector<16x128xf32>
    %183 = arith.mulf %180, %182 : vector<16x128xf32>
    %cst_64 = arith.constant 0.000000e+00 : f32
    %184 = vector.broadcast %cst_64 : f32 to vector<16x128xf32>
    %185 = arith.select %179, %183, %184 : vector<16x128xi1>, vector<16x128xf32>
    %c12_i32 = arith.constant 12 : i32
    %186 = tpu.dynamic_rotate %7 by %c12_i32 dim 0 : vector<16x128xf32>, i32 -> vector<16x128xf32>
    %c12_i32_65 = arith.constant 12 : i32
    %187 = tpu.dynamic_rotate %1 by %c12_i32_65 dim 0 : vector<16x128xf32>, i32 -> vector<16x128xf32>
    %c4_i32_66 = arith.constant 4 : i32
    %188 = vector.broadcast %c4_i32_66 : i32 to vector<16x128xi32>
    %189 = arith.addi %16, %188 : vector<16x128xi32>
    %c16_i32_67 = arith.constant 16 : i32
    %190 = vector.broadcast %c16_i32_67 : i32 to vector<16x128xi32>
    %191 = arith.cmpi slt, %189, %190 : vector<16x128xi32>
    %192 = vector.shape_cast %15 : vector<1x128xf32> to vector<1x128xf32>
    %193 = vector.broadcast %192 : vector<1x128xf32> to vector<16x128xf32>
    %194 = arith.select %191, %186, %193 : vector<16x128xi1>, vector<16x128xf32>
    %195 = vector.shape_cast %9 : vector<1x128xf32> to vector<1x128xf32>
    %196 = vector.broadcast %195 : vector<1x128xf32> to vector<16x128xf32>
    %197 = arith.select %191, %187, %196 : vector<16x128xi1>, vector<16x128xf32>
    %c4_i32_68 = arith.constant 4 : i32
    %198 = arith.muli %c4_i32_68, %21 : i32
    %c16_i32_69 = arith.constant 16 : i32
    %199 = arith.addi %c16_i32_69, %198 : i32
    %c4_i32_70 = arith.constant 4 : i32
    %200 = vector.broadcast %c4_i32_70 : i32 to vector<16x128xi32>
    %201 = arith.addi %16, %200 : vector<16x128xi32>
    %202 = vector.broadcast %199 : i32 to vector<16x128xi32>
    %203 = arith.cmpi slt, %201, %202 : vector<16x128xi32>
    %204 = arith.andi %172, %203 : vector<16x128xi1>
    %205 = arith.mulf %197, %1 : vector<16x128xf32>
    %206 = arith.subf %194, %7 : vector<16x128xf32>
    %207 = math.absf %206 : vector<16x128xf32>
    %208 = arith.mulf %205, %207 : vector<16x128xf32>
    %cst_71 = arith.constant 0.000000e+00 : f32
    %209 = vector.broadcast %cst_71 : f32 to vector<16x128xf32>
    %210 = arith.select %204, %208, %209 : vector<16x128xi1>, vector<16x128xf32>
    %211 = arith.addf %185, %210 : vector<16x128xf32>
    %212 = vector.shape_cast %211 : vector<16x128xf32> to vector<1x16x128xf32>
    %cst_72 = arith.constant dense<0.000000e+00> : vector<1xf32>
    %213 = vector.multi_reduction <add>, %212, %cst_72 [1, 2] : vector<1x16x128xf32> to vector<1xf32>
    %214 = vector.shape_cast %213 : vector<1xf32> to vector<1x1x1xf32>
    %215 = vector.extract %214[0, 0, 0] : f32 from vector<1x1x1xf32>
    %cst_73 = arith.constant 0.000000e+00 : f32
    %216 = vector.broadcast %cst_73 : f32 to vector<16x128xf32>
    %217 = arith.select %172, %1, %216 : vector<16x128xi1>, vector<16x128xf32>
    %218 = vector.shape_cast %217 : vector<16x128xf32> to vector<1x16x128xf32>
    %cst_74 = arith.constant dense<0.000000e+00> : vector<1xf32>
    %219 = vector.multi_reduction <add>, %218, %cst_74 [1, 2] : vector<1x16x128xf32> to vector<1xf32>
    %220 = vector.shape_cast %219 : vector<1xf32> to vector<1x1x1xf32>
    %221 = vector.extract %220[0, 0, 0] : f32 from vector<1x1x1xf32>
    %c4_i32_75 = arith.constant 4 : i32
    %222 = vector.broadcast %c4_i32_75 : i32 to vector<8x128xi32>
    %223 = arith.cmpi eq, %22, %222 : vector<8x128xi32>
    %cst_76 = arith.constant 0.000000e+00 : f32
    %224 = vector.broadcast %215 : f32 to vector<8x128xf32>
    %225 = vector.broadcast %cst_76 : f32 to vector<8x128xf32>
    %226 = arith.select %223, %224, %225 : vector<8x128xi1>, vector<8x128xf32>
    %227 = arith.addf %163, %226 : vector<8x128xf32>
    %c5_i32 = arith.constant 5 : i32
    %228 = vector.broadcast %c5_i32 : i32 to vector<8x128xi32>
    %229 = arith.cmpi eq, %22, %228 : vector<8x128xi32>
    %cst_77 = arith.constant 0.000000e+00 : f32
    %230 = vector.broadcast %221 : f32 to vector<8x128xf32>
    %231 = vector.broadcast %cst_77 : f32 to vector<8x128xf32>
    %232 = arith.select %229, %230, %231 : vector<8x128xi1>, vector<8x128xf32>
    %233 = arith.addf %227, %232 : vector<8x128xf32>
    %c7_i32 = arith.constant 7 : i32
    %234 = vector.broadcast %c7_i32 : i32 to vector<16x128xi32>
    %235 = arith.andi %16, %234 : vector<16x128xi32>
    %c0_i32_78 = arith.constant 0 : i32
    %236 = vector.broadcast %c0_i32_78 : i32 to vector<16x128xi32>
    %237 = arith.cmpi eq, %235, %236 : vector<16x128xi32>
    %c7_i32_79 = arith.constant 7 : i32
    %238 = vector.broadcast %c7_i32_79 : i32 to vector<16x128xi32>
    %239 = arith.andi %17, %238 : vector<16x128xi32>
    %c0_i32_80 = arith.constant 0 : i32
    %240 = vector.broadcast %c0_i32_80 : i32 to vector<16x128xi32>
    %241 = arith.cmpi eq, %239, %240 : vector<16x128xi32>
    %242 = arith.andi %237, %241 : vector<16x128xi1>
    %c120_i32 = arith.constant 120 : i32
    %243 = tpu.dynamic_rotate %7 by %c120_i32 dim 1 : vector<16x128xf32>, i32 -> vector<16x128xf32>
    %c120_i32_81 = arith.constant 120 : i32
    %244 = tpu.dynamic_rotate %1 by %c120_i32_81 dim 1 : vector<16x128xf32>, i32 -> vector<16x128xf32>
    %c8_i32 = arith.constant 8 : i32
    %245 = vector.broadcast %c8_i32 : i32 to vector<16x128xi32>
    %246 = arith.addi %17, %245 : vector<16x128xi32>
    %c128_i32_82 = arith.constant 128 : i32
    %247 = vector.broadcast %c128_i32_82 : i32 to vector<16x128xi32>
    %248 = arith.cmpi slt, %246, %247 : vector<16x128xi32>
    %249 = arith.andi %242, %248 : vector<16x128xi1>
    %250 = arith.mulf %244, %1 : vector<16x128xf32>
    %251 = arith.subf %243, %7 : vector<16x128xf32>
    %252 = math.absf %251 : vector<16x128xf32>
    %253 = arith.mulf %250, %252 : vector<16x128xf32>
    %cst_83 = arith.constant 0.000000e+00 : f32
    %254 = vector.broadcast %cst_83 : f32 to vector<16x128xf32>
    %255 = arith.select %249, %253, %254 : vector<16x128xi1>, vector<16x128xf32>
    %c8_i32_84 = arith.constant 8 : i32
    %256 = tpu.dynamic_rotate %7 by %c8_i32_84 dim 0 : vector<16x128xf32>, i32 -> vector<16x128xf32>
    %c8_i32_85 = arith.constant 8 : i32
    %257 = tpu.dynamic_rotate %1 by %c8_i32_85 dim 0 : vector<16x128xf32>, i32 -> vector<16x128xf32>
    %c8_i32_86 = arith.constant 8 : i32
    %258 = vector.broadcast %c8_i32_86 : i32 to vector<16x128xi32>
    %259 = arith.addi %16, %258 : vector<16x128xi32>
    %c16_i32_87 = arith.constant 16 : i32
    %260 = vector.broadcast %c16_i32_87 : i32 to vector<16x128xi32>
    %261 = arith.cmpi slt, %259, %260 : vector<16x128xi32>
    %262 = vector.shape_cast %15 : vector<1x128xf32> to vector<1x128xf32>
    %263 = vector.broadcast %262 : vector<1x128xf32> to vector<16x128xf32>
    %264 = arith.select %261, %256, %263 : vector<16x128xi1>, vector<16x128xf32>
    %265 = vector.shape_cast %9 : vector<1x128xf32> to vector<1x128xf32>
    %266 = vector.broadcast %265 : vector<1x128xf32> to vector<16x128xf32>
    %267 = arith.select %261, %257, %266 : vector<16x128xi1>, vector<16x128xf32>
    %c8_i32_88 = arith.constant 8 : i32
    %268 = arith.muli %c8_i32_88, %21 : i32
    %c16_i32_89 = arith.constant 16 : i32
    %269 = arith.addi %c16_i32_89, %268 : i32
    %c8_i32_90 = arith.constant 8 : i32
    %270 = vector.broadcast %c8_i32_90 : i32 to vector<16x128xi32>
    %271 = arith.addi %16, %270 : vector<16x128xi32>
    %272 = vector.broadcast %269 : i32 to vector<16x128xi32>
    %273 = arith.cmpi slt, %271, %272 : vector<16x128xi32>
    %274 = arith.andi %242, %273 : vector<16x128xi1>
    %275 = arith.mulf %267, %1 : vector<16x128xf32>
    %276 = arith.subf %264, %7 : vector<16x128xf32>
    %277 = math.absf %276 : vector<16x128xf32>
    %278 = arith.mulf %275, %277 : vector<16x128xf32>
    %cst_91 = arith.constant 0.000000e+00 : f32
    %279 = vector.broadcast %cst_91 : f32 to vector<16x128xf32>
    %280 = arith.select %274, %278, %279 : vector<16x128xi1>, vector<16x128xf32>
    %281 = arith.addf %255, %280 : vector<16x128xf32>
    %282 = vector.shape_cast %281 : vector<16x128xf32> to vector<1x16x128xf32>
    %cst_92 = arith.constant dense<0.000000e+00> : vector<1xf32>
    %283 = vector.multi_reduction <add>, %282, %cst_92 [1, 2] : vector<1x16x128xf32> to vector<1xf32>
    %284 = vector.shape_cast %283 : vector<1xf32> to vector<1x1x1xf32>
    %285 = vector.extract %284[0, 0, 0] : f32 from vector<1x1x1xf32>
    %cst_93 = arith.constant 0.000000e+00 : f32
    %286 = vector.broadcast %cst_93 : f32 to vector<16x128xf32>
    %287 = arith.select %242, %1, %286 : vector<16x128xi1>, vector<16x128xf32>
    %288 = vector.shape_cast %287 : vector<16x128xf32> to vector<1x16x128xf32>
    %cst_94 = arith.constant dense<0.000000e+00> : vector<1xf32>
    %289 = vector.multi_reduction <add>, %288, %cst_94 [1, 2] : vector<1x16x128xf32> to vector<1xf32>
    %290 = vector.shape_cast %289 : vector<1xf32> to vector<1x1x1xf32>
    %291 = vector.extract %290[0, 0, 0] : f32 from vector<1x1x1xf32>
    %c6_i32 = arith.constant 6 : i32
    %292 = vector.broadcast %c6_i32 : i32 to vector<8x128xi32>
    %293 = arith.cmpi eq, %22, %292 : vector<8x128xi32>
    %cst_95 = arith.constant 0.000000e+00 : f32
    %294 = vector.broadcast %285 : f32 to vector<8x128xf32>
    %295 = vector.broadcast %cst_95 : f32 to vector<8x128xf32>
    %296 = arith.select %293, %294, %295 : vector<8x128xi1>, vector<8x128xf32>
    %297 = arith.addf %233, %296 : vector<8x128xf32>
    %c7_i32_96 = arith.constant 7 : i32
    %298 = vector.broadcast %c7_i32_96 : i32 to vector<8x128xi32>
    %299 = arith.cmpi eq, %22, %298 : vector<8x128xi32>
    %cst_97 = arith.constant 0.000000e+00 : f32
    %300 = vector.broadcast %291 : f32 to vector<8x128xf32>
    %301 = vector.broadcast %cst_97 : f32 to vector<8x128xf32>
    %302 = arith.select %299, %300, %301 : vector<8x128xi1>, vector<8x128xf32>
    %303 = arith.addf %297, %302 : vector<8x128xf32>
    %c0_98 = arith.constant 0 : index
    %c0_99 = arith.constant 0 : index
    %c0_100 = arith.constant 0 : index
    %c0_101 = arith.constant 0 : index
    %304 = vector.load %arg8[%c0_98, %c0_99, %c0_100, %c0_101] : memref<1x1x8x128xf32, #tpu.memory_space<vmem>>, vector<1x1x8x128xf32>
    %305 = vector.shape_cast %304 : vector<1x1x8x128xf32> to vector<8x128xf32>
    %306 = vector.shape_cast %303 : vector<8x128xf32> to vector<1x1x8x128xf32>
    tpu.vector_store %arg8[%c0_98, %c0_99, %c0_100, %c0_101], %306 {strides = array<i32>} : memref<1x1x8x128xf32, #tpu.memory_space<vmem>>, vector<1x1x8x128xf32>,
    return
  }
  func.func @transform_0(%arg0: i32, %arg1: i32) -> (i32, i32, i32) {
    %c0_i32 = arith.constant 0 : i32
    %c0_i32_0 = arith.constant 0 : i32
    return %arg0, %arg1, %c0_i32 : i32, i32, i32
  }
  func.func @transform_1(%arg0: i32, %arg1: i32) -> (i32, i32, i32) {
    %c0_i32 = arith.constant 0 : i32
    %c0_i32_0 = arith.constant 0 : i32
    return %arg0, %arg1, %c0_i32 : i32, i32, i32
  }
  func.func @transform_2(%arg0: i32, %arg1: i32) -> (i32, i32, i32) {
    %c0_i32 = arith.constant 0 : i32
    %c0_i32_0 = arith.constant 0 : i32
    return %arg0, %arg1, %c0_i32 : i32, i32, i32
  }
  func.func @transform_3(%arg0: i32, %arg1: i32) -> (i32, i32, i32) {
    %c1_i32 = arith.constant 1 : i32
    %0 = arith.addi %arg1, %c1_i32 : i32
    %c2_i32 = arith.constant 2 : i32
    %1 = arith.muli %0, %c2_i32 : i32
    %c1_i32_0 = arith.constant 1 : i32
    %2 = arith.minsi %1, %c1_i32_0 : i32
    %c0_i32 = arith.constant 0 : i32
    %c0_i32_1 = arith.constant 0 : i32
    return %arg0, %2, %c0_i32 : i32, i32, i32
  }
  func.func @transform_4(%arg0: i32, %arg1: i32) -> (i32, i32, i32) {
    %c1_i32 = arith.constant 1 : i32
    %0 = arith.addi %arg1, %c1_i32 : i32
    %c2_i32 = arith.constant 2 : i32
    %1 = arith.muli %0, %c2_i32 : i32
    %c1_i32_0 = arith.constant 1 : i32
    %2 = arith.minsi %1, %c1_i32_0 : i32
    %c0_i32 = arith.constant 0 : i32
    %c0_i32_1 = arith.constant 0 : i32
    return %arg0, %2, %c0_i32 : i32, i32, i32
  }
  func.func @transform_5(%arg0: i32, %arg1: i32) -> (i32, i32, i32) {
    %c1_i32 = arith.constant 1 : i32
    %0 = arith.addi %arg1, %c1_i32 : i32
    %c2_i32 = arith.constant 2 : i32
    %1 = arith.muli %0, %c2_i32 : i32
    %c1_i32_0 = arith.constant 1 : i32
    %2 = arith.minsi %1, %c1_i32_0 : i32
    %c0_i32 = arith.constant 0 : i32
    %c0_i32_1 = arith.constant 0 : i32
    return %arg0, %2, %c0_i32 : i32, i32, i32
  }
  func.func @transform_6(%arg0: i32, %arg1: i32) -> (i32, i32, i32, i32) {
    %c0_i32 = arith.constant 0 : i32
    %c0_i32_0 = arith.constant 0 : i32
    %c0_i32_1 = arith.constant 0 : i32
    return %arg0, %arg1, %c0_i32, %c0_i32_0 : i32, i32, i32, i32
  }
}

</mosaic_0001>

<bundles_post_ra>
// kernel: tpu_custom_call.1
= control target key start
LH: loop header
LB: loop body
LE: loop exit
PB: predicated region body
PF: predicated region fallthrough
CT: control target
= control target key end

     0   :  { %s2248_s0 = inlined_call_operand.hbm [shape: f32[2,16,128], index: 0, kind: input, shape index: {}]   ;;  %s2249_s1 = inlined_call_operand.hbm [shape: f32[2,16,128], index: 1, kind: input, shape index: {}]   ;;  %s2250_s2 = inlined_call_operand.hbm [shape: f32[2,16,128], index: 2, kind: input, shape index: {}]   ;;  %s2251_s3 = inlined_call_operand.hbm [shape: f32[2,16,128], index: 3, kind: input, shape index: {}]   ;;  %s2252_s4 = inlined_call_operand.hbm [shape: f32[2,16,128], index: 4, kind: input, shape index: {}]   ;;  %s2253_s5 = inlined_call_operand.hbm [shape: f32[2,16,128], index: 5, kind: input, shape index: {}]   ;;  %s2254_s6 = inlined_call_operand.hbm [shape: f32[2,1,8,128], index: 6, kind: output, shape index: {}]  }
   0x1   :  { %2270 = sst [smem:[#allocation27_spill]] %s2248_s0 }
   0x2   :  { %2271 = sst [smem:[#allocation28_spill]] %s2249_s1 }
   0x3   :  { %2272 = sst [smem:[#allocation29_spill]] %s2251_s3 }
   0x4   :  { %2273 = sst [smem:[#allocation30_spill]] %s2254_s6 }
   0x5   :  { %11 = vsyncpa [#allocation3], 0 }
   0x6   :  { %13 = vsyncpa [#allocation3 + $0x1], 0 }
   0x7   :  { %14 = vsyncpa [#allocation6], 0 }
   0x8   :  { %16 = vsyncpa [#allocation6 + $0x1], 0 }
   0x9   :  { %17 = vsyncpa [#allocation9], 0 }
   0xa   :  { %19 = vsyncpa [#allocation9 + $0x1], 0 }
   0xb   :  { %20 = vsyncpa [#allocation12], 0 }
   0xc   :  { %22 = vsyncpa [#allocation12 + $0x1], 0 }
   0xd   :  { %23 = vsyncpa [#allocation4], 0 }
   0xe   :  { %25 = vsyncpa [#allocation4 + $0x1], 0  ;;  %s1619_s21 = smov 0   ;;  %s1621_s22 = smov 0  }
   0xf   :  { %s1623_s23 = smov 0   ;;  %s1625_s24 = smov 0  }
  0x10   :  { %s1627_s25 = smov 0   ;;  %s1629_s26 = smov 0  }
  0x11 LB: > { %2274 = sst [smem:[#allocation19_spill]] %s1549_s21  ;;  %s1650_s27 = sadd.s32 4294967295, %s1569_s26   ;;  %s1569_s26 = sphi %s1629_s26, %s31_s26   ;;  %s1565_s25 = sphi %s1627_s25, %s2344_s25   ;;  %s1561_s24 = sphi %s1625_s24, %s2343_s24   ;;  %s1557_s23 = sphi %s1623_s23, %s2342_s23   ;;  %s1553_s22 = sphi %s1621_s22, %s2346_s22   ;;  %s1549_s21 = sphi %s1619_s21, %s2345_s21  }
  0x12   : > { %2275 = sst [smem:[#allocation20_spill]] %s1557_s23  ;;  %s1155_s28 = sadd.s32 4294967294, %s1569_s26  }
  0x13   : > { %2276 = sst [smem:[#allocation21_spill]] %s1565_s25  ;;  %s43_s29 = sadd.s32 1, %s1565_s25 }
  0x14   : > { %2277 = sst [smem:[#allocation22_spill]] %s1569_s26  ;;  %s52_s30 = sadd.s32 1, %s1557_s23 }
  0x15   : > { %p45_p0 = scmp.ge.s32.totalorder %s43_s29, 2  ;;  %p59_p1 = scmp.ne.s32.totalorder %s1557_s23, %s1553_s22 }
  0x16   : > { %p60_p2 = scmp.eq.s32.totalorder %s1569_s26, 0  ;;  %p65_p3 = scmp.ne.s32.totalorder %s1553_s22, %s1549_s21 }
  0x17   : > { %s2348_s29 = smov (%p45_p0, %s43_s29), 0  ;;  %p66_p5 = scmp.eq.s32.totalorder %s1650_s27, 0 }
  0x18   : > { %2278 = sst [smem:[#allocation23_spill]] %s2348_s29  ;;  %p1662_p4 = por %p60_p2, %p59_p1 }
  0x19   : > { %s47_s8 = ssub.s32 %s1565_s25, %s2348_s29  ;;  %p255_p6 = scmp.eq.s32.totalorder %s1650_s27, 1 }
  0x1a   : > { %p50_p7 = scmp.eq.s32.totalorder %s47_s8, 0  ;;  %p1670_p8 = por %p66_p5, %p65_p3 }
  0x1b   : > { %p1674_p9 = por %p255_p6, %p59_p1  ;;  %p261_p10 = scmp.eq.s32.totalorder %s1155_s28, 1 }
  0x1c   : > { %s1679_s11 = scalar_select %p50_p7, %s1557_s23, %s52_s30  }
  0x1d   : > { %s2281_s10 = scalar_select %p1674_p9, 1, 0 }
  0x1e   : > { %2283 = sst [smem:[#allocation25_spill]] %s1679_s11  ;;  %p1681_p11 = por %p261_p10, %p65_p3 }
  0x1f   : > { %2282 = sst [smem:[#allocation24_spill]] %s2281_s10  ;;  %p1253_p13 = scmp.lt.s32.totalorder %s1569_s26, 2 }
  0x20   : > { %s2284_s12 = scalar_select %p1681_p11, 1, 0 }
  0x21   : > { %s1688_s13 = sand.u32 1, %s1557_s23   ;;  %s1694_s15 = sshll.u32 %s1565_s25, 8 }
  0x22   : > { %2285 = sst [smem:[#allocation26_spill]] %s2284_s12  ;;  %s1691_s14 = sshll.u32 %s1688_s13, 4 }
  0x23   : > { %p1698_p0 = pnand %p1253_p13, %p1662_p4  ;;  %s2256_s17 = sand.u32 1, %s1569_s26  }
  0x24   : > { %s2287_s1 = sld [smem:[#allocation28_spill]]  ;;  %s308_s28 = scalar_lea.vmem [#allocation5], %s1691_s14 }
  0x25   : > { %s317_s30 = sshll.u32 %s308_s28, 4  ;;  %p1176_p1 = scmp.ge.s32.totalorder %s1569_s26, 1  ;;  %s318_s30 = int_to_ptr.vmem [resolvable:$true] %s317_s30 }
  0x26   : > { %p420_p2 = scmp.lt.s32.totalorder %s1569_s26, 3  ;;  %s1712_s8 = scalar_lea.sflag [#allocation6], %s2256_s17 }
  0x27   : > { %p1716_p3 = pneg %p1698_p0  ;;  %s1322_s29 = scalar_lea.vmem %s318_s30, 256 }
  0x28   : > { %p1323_p4 = scmp.ne.s32.totalorder %s318_s30, %s1322_s29  ;;  %s1571_s18 = smov [#allocation5]  }
  0x29   : > { %s1327_s19 = sshll.u32 %s1571_s18, 4  ;;  %s1328_s19 = int_to_ptr.vmem [resolvable:$false] %s1327_s19 }
  0x2a   : > { %s316_s20 = scalar_lea.hbm %s2287_s1, %s1694_s15  ;;  %p1325_p5 = pnand %p1323_p4, %p1716_p3 }
  0x2b   : > { %s1329_s28 = scalar_lea.vmem %s1328_s19, 512  ;;  %p1330_p7 = scmp.lt.s32.totalorder %s318_s30, %s1328_s19 }
  0x2c   : > { %p1326_p6 = pneg %p1325_p5  ;;  %p1331_p10 = scmp.lt.s32.totalorder %s1329_s28, %s1322_s29 }
  0x2e   : > { %p1332_p13 = por %p1331_p10, %p1330_p7 }
  0x30   : > { %p1333_p12 = pnand %p1332_p13, %p1326_p6 }
  0x32   : > { %1336 = shalt.err (!%p1333_p12)
}
  0x33   : > { %s2260_s17 = smov 128   ;;  %s2262_s1 = smov 8  }
  0x34   : > { %1236 = dma.hbm_to_vmem [thread:$0]  (!%p1698_p0), %s316_s20, 256, %s318_s30, %s1712_s8, %s2260_s17, %s2260_s17, %s2262_s1  }
  0x35   : > { %p1732_p4 = pnand %p1176_p1, %p420_p2  ;;  %s1737_s18 = sshll.u32 %s1688_s13, 3 }
  0x36   : > { %s1740_s19 = sadd.s32 128, %s1694_s15  ;;  %s2290_s3 = sld [smem:[#allocation29_spill]] }
  0x37   : > { %s354_s23 = scalar_lea.vmem [#allocation8], %s1737_s18  ;;  %s2291_s20 = sand.u32 1, %s1569_s26  }
  0x38   : > { %s367_s12 = sshll.u32 %s354_s23, 4  ;;  %s1749_s30 = scalar_lea.sflag [#allocation9], %s2291_s20  ;;  %s368_s12 = int_to_ptr.vmem [resolvable:$true] %s367_s12 }
  0x39   : > { %s1350_s17 = scalar_lea.vmem %s368_s12, 128  ;;  %s1574_s1 = smov [#allocation8]  }
  0x3a   : > { %p1351_p12 = scmp.ne.s32.totalorder %s368_s12, %s1350_s17  ;;  %s1355_s21 = sshll.u32 %s1574_s1, 4  ;;  %s1356_s21 = int_to_ptr.vmem [resolvable:$false] %s1355_s21 }
  0x3b   : > { %s1357_s6 = scalar_lea.vmem %s1356_s21, 256  ;;  %p1358_p5 = scmp.lt.s32.totalorder %s368_s12, %s1356_s21 }
  0x3c   : > { %s365_s11 = scalar_lea.hbm %s2290_s3, %s1740_s19  ;;  %p1353_p1 = pnand %p1351_p12, %p1716_p3 }
  0x3d   : > { %p1359_p6 = scmp.lt.s32.totalorder %s1357_s6, %s1350_s17 }
  0x3e   : > { %p1354_p2 = pneg %p1353_p1 }
  0x3f   : > { %p1360_p7 = por %p1359_p6, %p1358_p5 }
  0x41   : > { %p1361_p10 = pnand %p1360_p7, %p1354_p2 }
  0x43   : > { %1364 = shalt.err (!%p1361_p10)
}
  0x44   : > { %1242 = dma.hbm_to_vmem [thread:$0]  (!%p1698_p0), %s365_s11, 128, %s368_s12, %s1749_s30  }
  0x45   : > { %s2292_s0 = sld [smem:[#allocation27_spill]]  ;;  %s285_s1 = scalar_lea.vmem [#allocation2], %s1691_s14 }
  0x46   : > { %s294_s20 = sshll.u32 %s285_s1, 4  ;;  %s282_s21 = scalar_lea.sflag [#allocation3], %s1688_s13  ;;  %s295_s20 = int_to_ptr.vmem [resolvable:$true] %s294_s20 }
  0x47   : > { %s1378_s6 = scalar_lea.vmem %s295_s20, 256  ;;  %s1575_s17 = smov [#allocation2]  }
  0x48   : > { %p1379_p13 = scmp.ne.s32.totalorder %s295_s20, %s1378_s6  ;;  %s1383_s3 = sshll.u32 %s1575_s17, 4  ;;  %s1384_s3 = int_to_ptr.vmem [resolvable:$false] %s1383_s3 }
  0x49   : > { %s1385_s26 = scalar_lea.vmem %s1384_s3, 512  ;;  %p1386_p2 = scmp.lt.s32.totalorder %s295_s20, %s1384_s3 }
  0x4a   : > { %p1381_p12 = pnand %p1379_p13, %p1716_p3  ;;  %p1387_p5 = scmp.lt.s32.totalorder %s1385_s26, %s1378_s6 }
  0x4b   : > { %s293_s28 = scalar_lea.hbm %s2292_s0, %s1694_s15 }
  0x4c   : > { %p1382_p1 = pneg %p1381_p12  ;;  %p1388_p6 = por %p1387_p5, %p1386_p2 }
  0x4e   : > { %p1389_p7 = pnand %p1388_p6, %p1382_p1 }
  0x50   : > { %1392 = shalt.err (!%p1389_p7)
}
  0x51   : > { %s2293_s11 = smov 8   ;;  %s2294_s12 = smov 128  }
  0x52   : > { %1233 = dma.hbm_to_vmem [thread:$0]  (!%p1698_p0), %s293_s28, 256, %s295_s20, %s282_s21, %s2294_s12, %s2294_s12, %s2293_s11  }
  0x53   : > { %s339_s1 = scalar_lea.hbm %s2250_s2, %s1694_s15  ;;  %s331_s17 = scalar_lea.vmem [#allocation7], %s1691_s14 }
  0x54   : > { %s340_s0 = sshll.u32 %s331_s17, 4  ;;  %s1576_s26 = smov [#allocation7]   ;;  %s341_s0 = int_to_ptr.vmem [resolvable:$true] %s340_s0 }
  0x55   : > { %s1406_s3 = scalar_lea.vmem %s341_s0, 256  ;;  %s1411_s6 = sshll.u32 %s1576_s26, 4  ;;  %s1412_s6 = int_to_ptr.vmem [resolvable:$false] %s1411_s6 }
  0x56   : > { %p1407_p10 = scmp.ne.s32.totalorder %s341_s0, %s1406_s3  ;;  %s1413_s10 = scalar_lea.vmem %s1412_s6, 512 }
  0x57   : > { %p1414_p1 = scmp.lt.s32.totalorder %s341_s0, %s1412_s6  ;;  %p1415_p2 = scmp.lt.s32.totalorder %s1413_s10, %s1406_s3 }
  0x58   : > { %p1409_p13 = pnand %p1407_p10, %p1716_p3 }
  0x59   : > { %p1416_p5 = por %p1415_p2, %p1414_p1 }
  0x5a   : > { %p1410_p12 = pneg %p1409_p13 }
  0x5c   : > { %p1417_p6 = pnand %p1416_p5, %p1410_p12 }
  0x5e   : > { %1420 = shalt.err (!%p1417_p6)
}
  0x5f   : > { %1239 = dma.hbm_to_vmem [thread:$0]  (!%p1698_p0), %s339_s1, 256, %s341_s0, %s1712_s8, %s2294_s12, %s2294_s12, %s2293_s11  }
  0x60   : > { %s389_s28 = scalar_lea.hbm %s2252_s4, %s1740_s19  ;;  %s378_s20 = scalar_lea.vmem [#allocation10], %s1737_s18 }
  0x61   : > { %s391_s21 = sshll.u32 %s378_s20, 4  ;;  %s1577_s23 = smov [#allocation10]   ;;  %s392_s21 = int_to_ptr.vmem [resolvable:$true] %s391_s21 }
  0x62   : > { %s1434_s10 = scalar_lea.vmem %s392_s21, 128  ;;  %s1439_s25 = sshll.u32 %s1577_s23, 4  ;;  %s1440_s25 = int_to_ptr.vmem [resolvable:$false] %s1439_s25 }
  0x63   : > { %p1435_p7 = scmp.ne.s32.totalorder %s392_s21, %s1434_s10  ;;  %s1441_s17 = scalar_lea.vmem %s1440_s25, 256 }
  0x64   : > { %p1442_p12 = scmp.lt.s32.totalorder %s392_s21, %s1440_s25  ;;  %p1443_p1 = scmp.lt.s32.totalorder %s1441_s17, %s1434_s10 }
  0x65   : > { %p1437_p10 = pnand %p1435_p7, %p1716_p3 }
  0x66   : > { %p1444_p2 = por %p1443_p1, %p1442_p12 }
  0x67   : > { %p1438_p13 = pneg %p1437_p10 }
  0x69   : > { %p1445_p5 = pnand %p1444_p2, %p1438_p13 }
  0x6b   : > { %1448 = shalt.err (!%p1445_p5)
}
  0x6c   : > { %1245 = dma.hbm_to_vmem [thread:$0]  (!%p1698_p0), %s389_s28, 128, %s392_s21, %s1749_s30  }
  0x6d   : > { %s413_s11 = scalar_lea.hbm %s2253_s5, %s1740_s19  ;;  %s402_s12 = scalar_lea.vmem [#allocation11], %s1737_s18 }
  0x6e   : > { %s415_s1 = sshll.u32 %s402_s12, 4  ;;  %s399_s3 = scalar_lea.sflag [#allocation12], %s1688_s13  ;;  %s416_s1 = int_to_ptr.vmem [resolvable:$true] %s415_s1 }
  0x6f   : > { %s1462_s26 = scalar_lea.vmem %s416_s1, 128  ;;  %s1578_s6 = smov [#allocation11]  }
  0x70   : > { %p1463_p6 = scmp.ne.s32.totalorder %s416_s1, %s1462_s26  ;;  %s1467_s14 = sshll.u32 %s1578_s6, 4  ;;  %s1468_s14 = int_to_ptr.vmem [resolvable:$false] %s1467_s14 }
  0x71   : > { %s1469_s15 = scalar_lea.vmem %s1468_s14, 256  ;;  %p1470_p13 = scmp.lt.s32.totalorder %s416_s1, %s1468_s14 }
  0x72   : > { %p1465_p7 = pnand %p1463_p6, %p1716_p3  ;;  %p1471_p12 = scmp.lt.s32.totalorder %s1469_s15, %s1462_s26 }
  0x74   : > { %p1466_p10 = pneg %p1465_p7  ;;  %p1472_p1 = por %p1471_p12, %p1470_p13 }
  0x76   : > { %p1473_p2 = pnand %p1472_p1, %p1466_p10 }
  0x78   : > { %1476 = shalt.err (!%p1473_p2)
}
  0x79   : > { %1248 = dma.hbm_to_vmem [thread:$0]  (!%p1698_p0), %s413_s11, 128, %s416_s1, %s399_s3  }
  0x7a   : > { %424 = sbr.rel (%p1732_p4) target bundleno = 511 (0x1ff), region = 44  ;;  %s1805_s13 = sand.u32 (!%p1732_p4), 1, %s1553_s22  }
  0x7b   : > { %s1808_s7 = sshll.u32 (!%p1732_p4), %s1805_s13, 4  ;;  %s427_s18 = scalar_lea.sflag (!%p1732_p4), [#allocation3], %s1805_s13 }
  0x7c   : > { %s430_s19 = scalar_lea.vmem (!%p1732_p4), [#allocation2], %s1808_s7 }
  0x7f   : > { %1528 = dma.done.wait (%p1670_p8), %s427_s18, 256  }
  0x80   : > { %1530 = vsyncadd (%p1670_p8), %s427_s18, 4294967040  ;;  %s435_s16 = sand.u32 1, %s1650_s27   ;;  %s439_s30 = scalar_lea.vmem [#allocation5], %s1808_s7 }
  0x81   : > { %s436_s29 = scalar_lea.sflag [#allocation6], %s435_s16 }
  0x82   : > { %1532 = dma.done.wait (%p1670_p8), %s436_s29, 512  }
  0x83   : > { %1534 = vsyncadd (%p1670_p8), %s436_s29, 4294966784  ;;  %s1823_s28 = sshll.u32 %s1805_s13, 3  ;;  %s448_s20 = scalar_lea.vmem [#allocation7], %s1808_s7 }
  0x84   : > { %s454_s21 = scalar_lea.sflag [#allocation9], %s435_s16  ;;  %s457_s10 = scalar_lea.vmem [#allocation8], %s1823_s28 }
  0x85   : > { %1536 = dma.done.wait (%p1670_p8), %s454_s21, 256  }
  0x86   : > { %1538 = vsyncadd (%p1670_p8), %s454_s21, 4294967040  ;;  %s466_s27 = scalar_lea.vmem [#allocation10], %s1823_s28  ;;  %s472_s23 = scalar_lea.sflag [#allocation12], %s1805_s13 }
  0x87   : > { %s475_s25 = scalar_lea.vmem [#allocation11], %s1823_s28 }
  0x88   : > { %1540 = dma.done.wait (%p1670_p8), %s472_s23, 128  }
  0x89   : > { %1542 = vsyncadd (%p1670_p8), %s472_s23, 4294967168  ;;  %v1838_v0 = vld [vmem:[%s448_s20] sm:$0xff]  ;;  %s1579_s17 = smov 126   ;;  %s1580_s0 = smov 127   ;;  %v547_v3 = vld [vmem:[%s430_s19 + $0x8] sm:$0xff]  ;;  %v559_v11 = vlaneseq }
  0x8a   : > { %v546_v1 = vld [vmem:[%s430_s19] sm:$0xff]  ;;  %669 = vrot.lane.b32.xlu0 %v1838_v0, %s1579_s17  ;;  %572 = vrot.lane.b32.xlu1 %v1838_v0, %s1580_s0  ;;  %v1842_v4 = vld [vmem:[%s448_s20 + $0x8] sm:$0xff]  ;;  %s1581_s9 = smov 124   ;;  %s1582_s8 = smov 120   ;;  %v593_v28 = vrot.slane %v1838_v0, 1  ;;  %v692_v32 = vrot.slane %v1838_v0, 2 }
  0x8b   : > { %v548_v2 = vld [vmem:[%s439_s30] sm:$0xff]  ;;  %v549_v6 = vld [vmem:[%s439_s30 + $0x8] sm:$0xff]  ;;  %v639_v10 = vadd.f32 %v1842_v4, %v1838_v0  ;;  %v1870_v14 = vshrl.u32 %v559_v11, 7  ;;  %v594_v29 = vrot.slane %v1842_v4, 1  ;;  %v1897_v30 = vand.u32 127, %v559_v11  ;;  %s1185_s18 = sshll.u32 %s1561_s24, 7 }
  0x8c   : > { %v550_v5 = vsub.f32 %v546_v1, %v548_v2  ;;  %v551_v7 = vsub.f32 %v547_v3, %v549_v6  ;;  %v555_v12 = vld [vmem:[%s457_s10] sm:$0x1]  ;;  %v556_v13 = vld [vmem:[%s466_s27] sm:$0x1]  ;;  %v693_v35 = vrot.slane %v1842_v4, 2  ;;  %s528_s19 = scalar_lea.vmem [#allocation13], %s1823_s28 }
  0x8d   : > { %v557_v15 = vsub.f32 %v555_v12, %v556_v13  ;;  %v554_v16 = vld [vmem:[%s475_s25] sm:$0x1]  ;;  %v1875_v17 = vadd.s32 8, %v1870_v14  ;;  %v603_v19 = vsub.s32 0, %v1870_v14  ;;  %vm590_vm0 = vcmp.lt.s32.totalorder %v1870_v14, 7  ;;  %s951_s16 = sshll.u32 %s528_s19, 4  ;;  %s952_s16 = int_to_ptr.vmem [resolvable:$true] %s951_s16 }
  0x8e   : > { %v1845_v8 = vmul.f32 %v550_v5, %v1838_v0  ;;  %574 = vrot.lane.b32.xlu1 %v1842_v4, %s1580_s0  ;;  %v1850_v9 = vmul.f32 %v551_v7, %v1842_v4  ;;  %vm689_vm1 = vcmp.lt.s32.totalorder %v1870_v14, 6  ;;  %v596_v33 = vsel %vm590_vm0, %v594_v29, %v593_v28  ;;  %s2336_s20 = sld [smem:[#allocation30_spill]]  ;;  %s937_s10 = scalar_lea.sflag [#allocation4], %s1805_s13 }
  0x8f   : > { %v558_v18 = vmul.f32 %v557_v15, %v554_v16  ;;  %v1879_v20 = vadd.s32 1, %v1875_v17  ;;  %v1882_v21 = vadd.s32 2, %v1875_v17  ;;  %v1899_v31 = vrot.slane %v554_v16, %v603_v19  ;;  %s1477_s27 = scalar_lea.vmem %s952_s16, 128  ;;  %s1583_s23 = smov [#allocation13]  }
  0x90   : > { %568 = vrot.lane.b32.xlu0 %v1845_v8, %s1580_s0  ;;  %v588_v22 = vrot.slane %v1845_v8, 1  ;;  %v589_v23 = vrot.slane %v1850_v9, 1  ;;  %v687_v24 = vrot.slane %v1845_v8, 2  ;;  %v688_v25 = vrot.slane %v1850_v9, 2  ;;  %p1478_p8 = scmp.ne.s32.totalorder %s952_s16, %s1477_s27  ;;  %s1481_s25 = sshll.u32 %s1583_s23, 4  ;;  %s1482_s25 = int_to_ptr.vmem [resolvable:$false] %s1481_s25 }
  0x91   : > { %v1889_v26 = vrot.slane %v558_v18, %v603_v19  ;;  %vm600_vm2 = vcmp.lt.s32.totalorder %v1879_v20, 16  ;;  %vm699_vm3 = vcmp.lt.s32.totalorder %v1882_v21, 16  ;;  %v657_v38 = vand.u32 1, %v1870_v14  ;;  %s1483_s24 = scalar_lea.vmem %s1482_s25, 256  ;;  %p1484_p4 = scmp.lt.s32.totalorder %s952_s16, %s1482_s25 }
  0x92   : > { %671 = vrot.lane.b32.xlu1 %v1842_v4, %s1579_s17  ;;  %v592_v27 = vsel %vm590_vm0, %v589_v23, %v588_v22  ;;  %v691_v34 = vsel %vm689_vm1, %v688_v25, %v687_v24  ;;  %v591_v37 = vsel %vm590_vm0, %v588_v22, %v589_v23  ;;  %v690_v39 = vsel %vm689_vm1, %v687_v24, %v688_v25  ;;  %p1479_p0 = pnand %p1478_p8, %p1674_p9  ;;  %p1485_p5 = scmp.lt.s32.totalorder %s1483_s24, %s1477_s27 }
  0x93   : > { %v606_v36 = vsel %vm600_vm2, %v592_v27, %v1889_v26  ;;  %v612_v40 = vsel %vm600_vm2, %v596_v33, %v1899_v31  ;;  %v701_v41 = vsel %vm699_vm3, %v691_v34, %v1889_v26  ;;  %v1923_v42 = vadd.s32 1, %v1897_v30 }
  0x94   : > { %570 = vrot.lane.b32.xlu0 %v1850_v9, %s1580_s0  ;;  %v620_v43 = vsub.f32 %v606_v36, %v1850_v9  ;;  %v661_v44 = vand.u32 1, %v1897_v30  ;;  %v695_v45 = vsel %vm689_vm1, %v693_v35, %v692_v32  ;;  %v595_v46 = vsel %vm590_vm0, %v593_v28, %v594_v29  ;;  %s949_s21 = scalar_lea.hbm %s2336_s20, %s1185_s18  ;;  %p1480_p3 = pneg %p1479_p0 }
  0x95   : > { %v619_v47 = vsub.f32 %v591_v37, %v1845_v8  ;;  %v658_v48 = vand.u32 1, %v1875_v17  ;;  %v713_v49 = vsub.f32 %v690_v39, %v1845_v8  ;;  %v618_v52 = vmul.f32 %v612_v40, %v1842_v4  ;;  %p1486_p6 = por %p1485_p5, %p1484_p4 }
  0x96   : > { %667 = vrot.lane.b32.xlu1 %v1850_v9, %s1579_s17  ;;  %vm1937_vm4 = vcmp.eq.s32.totalorder %v657_v38, 0  ;;  %v694_v54 = vsel %vm689_vm1, %v692_v32, %v693_v35  ;;  %v714_v55 = vsub.f32 %v701_v41, %v1850_v9  ;;  %v703_v56 = vsel %vm699_vm3, %v695_v45, %v1899_v31 }
  0x97   : > { %v783_v57 = vrot.slane %v1845_v8, 4  ;;  %v784_v58 = vrot.slane %v1850_v9, 4  ;;  %v1950_v59 = vadd.s32 4, %v1875_v17  ;;  %v622_v60 = vand.u32 2147483647, %v620_v43  ;;  %p1487_p7 = pnand %p1486_p6, %p1480_p3 }
  0x98   : > { %665 = vrot.lane.b32.xlu0 %v1845_v8, %s1579_s17  ;;  %vm1952_vm5 = vcmp.eq.s32.totalorder %v661_v44, 0  ;;  %v1957_v62 = vadd.s32 2, %v1897_v30  ;;  %vm785_vm6 = vcmp.lt.s32.totalorder %v1870_v14, 4  ;;  %vm577_vm7 = vcmp.lt.s32.totalorder %v1923_v42, 128 }
  0x99   : > { %v617_v63 = vmul.f32 %v595_v46, %v1838_v0  ;;  %v621_v1 = vand.u32 2147483647, %v619_v47  ;;  %v711_v2 = vmul.f32 %v694_v54, %v1838_v0  ;;  %v715_v3 = vand.u32 2147483647, %v713_v49  ;;  %vm1973_vm9 = vmand %vm1937_vm4, %vm1952_vm5 }
  0x9a   : > { %763 = vrot.lane.b32.xlu1 %v1850_v9, %s1581_s9  ;;  %vm1963_vm8 = vcmp.eq.s32.totalorder %v658_v48, 0  ;;  %v712_v7 = vmul.f32 %v703_v56, %v1842_v4  ;;  %v753_v11 = vand.u32 3, %v1870_v14  ;;  %v787_v15 = vsel %vm785_vm6, %v784_v58, %v783_v57 }
  0x9b   : > { %v788_v16 = vrot.slane %v1838_v0, 4  ;;  %v789_v18 = vrot.slane %v1842_v4, 4  ;;  %vm795_vm10 = vcmp.lt.s32.totalorder %v1950_v59, 16  ;;  %v624_v22 = vmul.f32 %v622_v60, %v618_v52  ;;  %vm1991_vm12 = vmand %vm1963_vm8, %vm1952_vm5 }
  0x9c   : > { %761 = vrot.lane.b32.xlu0 %v1845_v8, %s1581_s9  ;;  %vm674_vm11 = vcmp.lt.s32.totalorder %v1957_v62, 128  ;;  %v733_v23 = vsel %vm1973_vm9, %v1838_v0, 0.0  ;;  %v623_v24 = vmul.f32 %v621_v1, %v617_v63  ;;  %v1995_v27 = vmul.f32 %v715_v3, %v711_v2  ;;  %vm2021_vm14 = vmand %vm1991_vm12, %vm699_vm3 }
  0x9d   : > { %v754_v28 = vand.u32 3, %v1875_v17  ;;  %v757_v29 = vand.u32 3, %v1897_v30  ;;  %vm2000_vm13 = vcmp.eq.s32.totalorder %v753_v11, 0  ;;  %v797_v36 = vsel %vm795_vm10, %v787_v15, %v1889_v26  ;;  %vm2071_vm3 = vmand %vm1991_vm12, %vm674_vm11 }
  0x9e   : > { %767 = vrot.lane.b32.xlu1 %v1842_v4, %s1581_s9  ;;  %v2008_v39 = vadd.s32 4, %v1897_v30  ;;  %v786_v40 = vsel %vm785_vm6, %v783_v57, %v784_v58  ;;  %v791_v41 = vsel %vm785_vm6, %v789_v18, %v788_v16  ;;  %v626_v45 = vsel %vm600_vm2, %v624_v22, 0.0  ;;  %vm2058_vm2 = vmand %vm1973_vm9, %vm674_vm11 }
  0x9f   : > { %v790_v46 = vsel %vm785_vm6, %v788_v16, %v789_v18  ;;  %v719_v47 = vsel %vm1973_vm9, %v1995_v27, 0.0  ;;  %vm2030_vm15 = vcmp.eq.s32.totalorder %v754_v28, 0  ;;  %vm2034_vm0 = vcmp.eq.s32.totalorder %v757_v29, 0 }
  0xa0   : > { %765 = vrot.lane.b32.xlu0 %v1838_v0, %s1581_s9  ;;  %v810_v21 = vsub.f32 %v797_v36, %v1850_v9  ;;  %v799_v53 = vsel %vm795_vm10, %v791_v41, %v1899_v31  ;;  %v809_v54 = vsub.f32 %v786_v40, %v1845_v8  ;;  %vm770_vm1 = vcmp.lt.s32.totalorder %v2008_v39, 128  ;;  %vm2080_vm4 = vmand %vm2030_vm15, %vm2034_vm0 }
  0xa1   : > { %v807_v58 = vmul.f32 %v790_v46, %v1838_v0  ;;  %v849_v31 = vand.u32 7, %v1870_v14  ;;  %v850_v29 = vand.u32 7, %v1875_v17  ;;  %vm2093_vm5 = vmand %vm2000_vm13, %vm2034_vm0  ;;  %v895_v35 = vsub.f32 %v1850_v9, %v1845_v8 }
  0xa2   : > { %859 = vrot.lane.b32.xlu1 %v1850_v9, %s1582_s8  ;;  %v812_v6 = vand.u32 2147483647, %v810_v21  ;;  %v811_v16 = vand.u32 2147483647, %v809_v54  ;;  %vm2103_vm6 = vmand %vm2080_vm4, %vm795_vm10  ;;  %v734_v46 = vsel %vm1991_vm12, %v1842_v4, 0.0  ;;  %v865_v25 = vadd.s32 8, %v1897_v30 }
  0xa3   : > { %vm2122_vm8 = vmand %vm2080_vm4, %vm770_vm1  ;;  %vm2126_vm10 = vcmp.eq.s32.totalorder %v850_v29, 0  ;;  %v893_v39 = vmul.f32 %v1842_v4, %v1838_v0  ;;  %v830_v13 = vsel %vm2080_vm4, %v1842_v4, 0.0  ;;  %vm749_vm4 = vcmp.eq.s32.totalorder %v1870_v14, 3 }
  0xa4   : > { %857 = vrot.lane.b32.xlu0 %v1845_v8, %s1582_s8  ;;  %vm2135_vm11 = vmand %vm2093_vm5, %vm770_vm1  ;;  %vm649_vm1 = vcmp.eq.s32.totalorder %v1870_v14, 0 }
  0xa6   : > { %863 = vrot.lane.b32.xlu1 %v1842_v4, %s1582_s8 }
  0xa8   : > { %861 = vrot.lane.b32.xlu0 %v1838_v0, %s1582_s8 }
  0xca   : > { %640 = vadd.xlane.f32.xlu1 %v639_v10  ;;  %v716_v10 = vand.u32 2147483647, %v714_v55 }
  0xcc   : > { %v718_v38 = vmul.f32 %v716_v10, %v712_v7 }
  0xce   : > { %v720_v57 = vsel %vm2021_vm14, %v718_v38, 0.0  ;;  %vm866_vm14 = vcmp.lt.s32.totalorder %v865_v25, 128 }
  0xfc   : > { %v1934_v50 = vpop.permute.xlu0 %669  ;;  %v573_v51 = vpop.permute.xlu1 %572 }
  0xfd   : > { %v578_v32 = vmul.f32 %v573_v51, %v1838_v0  ;;  %v677_v7 = vmul.f32 %v1934_v50, %v1838_v0 }
 0x100   : > { %v575_v5 = vpop.permute.xlu1 %574 }
 0x101   : > { %v579_v49 = vmul.f32 %v575_v5, %v1842_v4  ;;  %v808_v5 = vmul.f32 %v799_v53, %v1842_v4 }
 0x102   : > { %v569_v12 = vpop.permute.xlu0 %568 }
 0x103   : > { %v580_v19 = vsub.f32 %v569_v12, %v1845_v8 }
 0x104   : > { %v672_v34 = vpop.permute.xlu1 %671 }
 0x105   : > { %v582_v33 = vand.u32 2147483647, %v580_v19  ;;  %v678_v1 = vmul.f32 %v672_v34, %v1842_v4 }
 0x106   : > { %v571_v37 = vpop.permute.xlu0 %570 }
 0x107   : > { %v584_v43 = vmul.f32 %v582_v33, %v578_v32  ;;  %v581_v44 = vsub.f32 %v571_v37, %v1850_v9  ;;  %v853_v32 = vand.u32 7, %v1897_v30  ;;  %v814_v37 = vmul.f32 %v812_v6, %v808_v5 }
 0x108   : > { %v668_v52 = vpop.permute.xlu1 %667 }
 0x109   : > { %v583_v51 = vand.u32 2147483647, %v581_v44  ;;  %v680_v55 = vsub.f32 %v668_v52, %v1850_v9  ;;  %v586_v63 = vsel %vm577_vm7, %v584_v43, 0.0  ;;  %v813_v43 = vmul.f32 %v811_v16, %v807_v58 }
 0x10a   : > { %v666_v56 = vpop.permute.xlu0 %665  ;;  %v627_v27 = vadd.f32 %v623_v24, %v586_v63  ;;  %v816_v53 = vsel %vm2103_vm6, %v814_v37, 0.0  ;;  %vm2141_vm12 = vcmp.eq.s32.totalorder %v853_v32, 0  ;;  %vm845_vm6 = vcmp.eq.s32.totalorder %v1870_v14, 5 }
 0x10b   : > { %v585_v60 = vmul.f32 %v583_v51, %v579_v49  ;;  %v679_v61 = vsub.f32 %v666_v56, %v1845_v8  ;;  %v682_v2 = vand.u32 2147483647, %v680_v55  ;;  %v815_v30 = vsel %vm2093_vm5, %v813_v43, 0.0  ;;  %vm856_vm13 = vmand %vm2126_vm10, %vm2141_vm12 }
 0x10c   : > { %v764_v11 = vpop.permute.xlu1 %763  ;;  %vm868_vm0 = vmand %vm856_vm13, %vm866_vm14 }
 0x10d   : > { %v681_v10 = vand.u32 2147483647, %v679_v61  ;;  %v587_v12 = vsel %vm577_vm7, %v585_v60, 0.0  ;;  %v684_v18 = vmul.f32 %v682_v2, %v678_v1  ;;  %v776_v19 = vsub.f32 %v764_v11, %v1850_v9 }
 0x10e   : > { %v762_v22 = vpop.permute.xlu0 %761  ;;  %v628_v50 = vadd.f32 %v626_v45, %v587_v12  ;;  %vm2113_vm7 = vcmp.eq.s32.totalorder %v849_v31, 0  ;;  %v735_v61 = vadd.f32 %v734_v46, %v733_v23  ;;  %v829_v31 = vsel %vm2093_vm5, %v1838_v0, 0.0 }
 0x10f   : > { %v683_v62 = vmul.f32 %v681_v10, %v677_v7  ;;  %v775_v28 = vsub.f32 %v762_v22, %v1845_v8  ;;  %v778_v33 = vand.u32 2147483647, %v776_v19  ;;  %v686_v24 = vsel %vm2071_vm3, %v684_v18, 0.0  ;;  %vm2169_vm9 = vmand %vm2113_vm7, %vm2141_vm12 }
 0x110   : > { %v629_v34 = vadd.f32 %v628_v50, %v627_v27  ;;  %v768_v38 = vpop.permute.xlu1 %767  ;;  %v722_v40 = vadd.f32 %v720_v57, %v686_v24  ;;  %v897_v57 = vand.u32 2147483647, %v895_v35  ;;  %v831_v12 = vadd.f32 %v830_v13, %v829_v31  ;;  %vm867_vm15 = vmand %vm2169_vm9, %vm866_vm14 }
 0x111   : > { %v685_v17 = vsel %vm2058_vm2, %v683_v62, 0.0  ;;  %v774_v44 = vmul.f32 %v768_v38, %v1842_v4  ;;  %v777_v48 = vand.u32 2147483647, %v775_v28  ;;  %v915_v18 = vsel %vm2169_vm9, %v1838_v0, 0.0 }
 0x112   : > { %v766_v45 = vpop.permute.xlu0 %765  ;;  %630 = vadd.xlane.f32.xlu0 %v629_v34  ;;  %v721_v26 = vadd.f32 %v719_v47, %v685_v17  ;;  %v899_v6 = vmul.f32 %v897_v57, %v893_v39  ;;  %v916_v19 = vsel %vm856_vm13, %v1842_v4, 0.0  ;;  %vm653_vm2 = vcmp.eq.s32.totalorder %v1870_v14, 1 }
 0x113   : > { %v773_v20 = vmul.f32 %v766_v45, %v1838_v0  ;;  %v780_v49 = vmul.f32 %v778_v33, %v774_v44  ;;  %v917_v42 = vadd.f32 %v916_v19, %v915_v18  ;;  %vm745_vm3 = vcmp.eq.s32.totalorder %v1870_v14, 2 }
 0x114   : > { %v723_v51 = vadd.f32 %v722_v40, %v721_v26  ;;  %v860_v56 = vpop.permute.xlu1 %859  ;;  %v901_v50 = vsel %vm2169_vm9, %v899_v6, 0.0  ;;  %vm841_vm5 = vcmp.eq.s32.totalorder %v1870_v14, 4  ;;  %vm927_vm7 = vcmp.eq.s32.totalorder %v1870_v14, 6 }
 0x115   : > { %v779_v55 = vmul.f32 %v777_v48, %v773_v20  ;;  %v872_v58 = vsub.f32 %v860_v56, %v1850_v9  ;;  %v782_v63 = vsel %vm2122_vm8, %v780_v49, 0.0  ;;  %vm931_vm8 = vcmp.eq.s32.totalorder %v1870_v14, 7 }
 0x116   : > { %v858_v60 = vpop.permute.xlu0 %857  ;;  %724 = vadd.xlane.f32.xlu0 %v723_v51  ;;  %v818_v9 = vadd.f32 %v816_v53, %v782_v63 }
 0x117   : > { %v871_v1 = vsub.f32 %v858_v60, %v1845_v8  ;;  %v781_v2 = vsel %vm2135_vm11, %v779_v55, 0.0  ;;  %v874_v8 = vand.u32 2147483647, %v872_v58 }
 0x118   : > { %v817_v3 = vadd.f32 %v815_v30, %v781_v2  ;;  %v864_v5 = vpop.permute.xlu1 %863 }
 0x119   : > { %v870_v7 = vmul.f32 %v864_v5, %v1842_v4  ;;  %v873_v15 = vand.u32 2147483647, %v871_v1 }
 0x11a   : > { %v862_v10 = vpop.permute.xlu0 %861  ;;  %736 = vadd.xlane.f32.xlu0 %v735_v61  ;;  %v819_v11 = vadd.f32 %v818_v9, %v817_v3 }
 0x11b   : > { %v869_v16 = vmul.f32 %v862_v10, %v1838_v0  ;;  %v876_v22 = vmul.f32 %v874_v8, %v870_v7 }
 0x11c   : > { %820 = vadd.xlane.f32.xlu1 %v819_v11 }
 0x11d   : > { %v875_v27 = vmul.f32 %v873_v15, %v869_v16  ;;  %v878_v62 = vsel %vm868_vm0, %v876_v22, 0.0 }
 0x11e   : > { %832 = vadd.xlane.f32.xlu0 %v831_v12 }
 0x11f   : > { %v877_v0 = vsel %vm867_vm15, %v875_v27, 0.0 }
 0x120   : > { %v903_v4 = vadd.f32 %v901_v50, %v877_v0 }
 0x122   : > { %918 = vadd.xlane.f32.xlu0 %v917_v42  ;;  %v905_v28 = vadd.f32 %v903_v4, %v878_v62 }
 0x124   : > { %906 = vadd.xlane.f32.xlu1 %v905_v28 }
 0x153   : > { %v641_v29 = vpop.xlane.xlu1 %640 }
 0x154   : > { %v642_v32 = vrot.slane %v641_v29, 4 }
 0x156   : > { %v643_v33 = vadd.f32 %v642_v32, %v641_v29 }
 0x158   : > { %v644_v34 = vrot.slane %v643_v33, 2 }
 0x15a   : > { %v645_v37 = vadd.f32 %v644_v34, %v643_v33 }
 0x15c   : > { %v646_v43 = vrot.slane %v645_v37, 1 }
 0x15e   : > { %v647_v20 = vadd.f32 %v646_v43, %v645_v37 }
 0x19b   : > { %v631_v24 = vpop.xlane.xlu0 %630 }
 0x19c   : > { %v632_v36 = vrot.slane %v631_v24, 4 }
 0x19e   : > { %v633_v38 = vadd.f32 %v632_v36, %v631_v24 }
 0x19f   : > { %v725_v17 = vpop.xlane.xlu0 %724 }
 0x1a0   : > { %v634_v40 = vrot.slane %v633_v38, 2  ;;  %v726_v41 = vrot.slane %v725_v17, 4 }
 0x1a2   : > { %v727_v35 = vadd.f32 %v726_v41, %v725_v17  ;;  %v635_v44 = vadd.f32 %v634_v40, %v633_v38 }
 0x1a3   : > { %v737_v45 = vpop.xlane.xlu0 %736 }
 0x1a4   : > { %v728_v26 = vrot.slane %v727_v35, 2  ;;  %v738_v46 = vrot.slane %v737_v45, 4  ;;  %v636_v59 = vrot.slane %v635_v44, 1 }
 0x1a5   : > { %v821_v48 = vpop.xlane.xlu1 %820 }
 0x1a6   : > { %v739_v21 = vadd.f32 %v738_v46, %v737_v45  ;;  %v822_v47 = vrot.slane %v821_v48, 4  ;;  %v637_v25 = vadd.f32 %v636_v59, %v635_v44  ;;  %v729_v49 = vadd.f32 %v728_v26, %v727_v35 }
 0x1a7   : > { %v833_v51 = vpop.xlane.xlu0 %832 }
 0x1a8   : > { %v740_v52 = vrot.slane %v739_v21, 2  ;;  %v823_v53 = vadd.f32 %v822_v47, %v821_v48  ;;  %v834_v54 = vrot.slane %v833_v51, 4  ;;  %1200 = vpush %v637_v25  ;;  %v730_v55 = vrot.slane %v729_v49, 1 }
 0x1a9   : > { %1202 = vpush %v647_v20 }
 0x1aa   : > { %v824_v56 = vrot.slane %v823_v53, 2  ;;  %v835_v30 = vadd.f32 %v834_v54, %v833_v51  ;;  %v731_v39 = vadd.f32 %v730_v55, %v729_v49  ;;  %v741_v57 = vadd.f32 %v740_v52, %v739_v21 }
 0x1ab   : > { %v919_v58 = vpop.xlane.xlu0 %918 }
 0x1ac   : > { %v836_v60 = vrot.slane %v835_v30, 2  ;;  %v920_v61 = vrot.slane %v919_v58, 4  ;;  %1204 = vpush %v731_v39  ;;  %v742_v63 = vrot.slane %v741_v57, 1  ;;  %v825_v31 = vadd.f32 %v824_v56, %v823_v53 }
 0x1ad   : > { %v907_v1 = vpop.xlane.xlu1 %906 }
 0x1ae   : > { %v921_v2 = vadd.f32 %v920_v61, %v919_v58  ;;  %v908_v9 = vrot.slane %v907_v1, 4  ;;  %v743_v13 = vadd.f32 %v742_v63, %v741_v57  ;;  %v826_v23 = vrot.slane %v825_v31, 1 }
 0x1af   : > { %v837_v3 = vadd.f32 %v836_v60, %v835_v30 }
 0x1b0   : > { %v922_v8 = vrot.slane %v921_v2, 2  ;;  %v909_v5 = vadd.f32 %v908_v9, %v907_v1  ;;  %1206 = vpush %v743_v13  ;;  %v827_v6 = vadd.f32 %v826_v23, %v825_v31 }
 0x1b1   : > { %v838_v7 = vrot.slane %v837_v3, 1 }
 0x1b2   : > { %v923_v10 = vadd.f32 %v922_v8, %v921_v2  ;;  %v910_v11 = vrot.slane %v909_v5, 2  ;;  %1208 = vpush %v827_v6 }
 0x1b3   : > { %v839_v12 = vadd.f32 %v838_v7, %v837_v3 }
 0x1b4   : > { %v911_v15 = vadd.f32 %v910_v11, %v909_v5  ;;  %v924_v16 = vrot.slane %v923_v10, 1 }
 0x1b5   : > { %1210 = vpush %v839_v12 }
 0x1b6   : > { %v912_v18 = vrot.slane %v911_v15, 1  ;;  %v925_v22 = vadd.f32 %v924_v16, %v923_v10 }
 0x1b8   : > { %v913_v19 = vadd.f32 %v912_v18, %v911_v15 }
 0x1ba   : > { %1212 = vpush %v913_v19 }
 0x1bb   : > { %1214 = vpush %v925_v22 }
 0x1d9   : > { %s1201_s11 = spop %1200 }
 0x1da   : > { %v650_v27 = vstv %s1201_s11  ;;  %s1203_s12 = spop %1202 }
 0x1db   : > { %v654_v50 = vstv %s1203_s12  ;;  %v651_v42 = vsel %vm649_vm1, %v650_v27, 0.0 }
 0x1dc   : > { %v655_v0 = vsel %vm653_vm2, %v654_v50, 0.0 }
 0x1dd   : > { %s1205_s1 = spop %1204  ;;  %v656_v28 = vadd.f32 %v655_v0, %v651_v42 }
 0x1de   : > { %v746_v4 = vstv %s1205_s1 }
 0x1df   : > { %v747_v62 = vsel %vm745_vm3, %v746_v4, 0.0 }
 0x1e0   : > { %v748_v29 = vadd.f32 %v747_v62, %v656_v28 }
 0x1e1   : > { %s1207_s3 = spop %1206 }
 0x1e2   : > { %v750_v32 = vstv %s1207_s3 }
 0x1e3   : > { %v751_v33 = vsel %vm749_vm4, %v750_v32, 0.0  ;;  %s1209_s26 = spop %1208 }
 0x1e4   : > { %v752_v34 = vadd.f32 %v751_v33, %v748_v29  ;;  %v842_v24 = vstv %s1209_s26 }
 0x1e5   : > { %v843_v36 = vsel %vm841_vm5, %v842_v24, 0.0 }
 0x1e6   : > { %s1211_s6 = spop %1210  ;;  %v844_v38 = vadd.f32 %v843_v36, %v752_v34 }
 0x1e7   : > { %v846_v37 = vstv %s1211_s6 }
 0x1e8   : > { %v847_v17 = vsel %vm845_vm6, %v846_v37, 0.0 }
 0x1e9   : > { %v848_v40 = vadd.f32 %v847_v17, %v844_v38 }
 0x1eb   : > { %s1213_s14 = spop %1212 }
 0x1ec   : > { %v928_v41 = vstv %s1213_s14  ;;  %s1215_s15 = spop %1214 }
 0x1ed   : > { %v929_v43 = vsel %vm927_vm7, %v928_v41, 0.0  ;;  %v932_v35 = vstv %s1215_s15 }
 0x1ee   : > { %v930_v44 = vadd.f32 %v929_v43, %v848_v40  ;;  %v933_v45 = vsel %vm931_vm8, %v932_v35, 0.0 }
 0x1f0   : > { %v934_v26 = vadd.f32 %v933_v45, %v930_v44 }
 0x1f2   : > { %935 = vst [vmem:[%s528_s19] sm:$0xff] %v934_v26 }
 0x1f3   : > { %1490 = shalt.err (!%p1487_p7)
}
 0x1f4   : > { %s1491_s28 = scalar_lea.hbm %s949_s21, 128  ;;  %s1495_s0 = scalar_lea.hbm %s2336_s20, 256 }
 0x1f5   : > { %p1492_p10 = scmp.ne.s32.totalorder %s949_s21, %s1491_s28  ;;  %p1496_p1 = scmp.lt.s32.totalorder %s949_s21, %s2336_s20 }
 0x1f6   : > { %p1497_p2 = scmp.lt.s32.totalorder %s1495_s0, %s1491_s28 }
 0x1f7   : > { %p1493_p13 = pnand %p1492_p10, %p1674_p9 }
 0x1f8   : > { %p1498_p8 = por %p1497_p2, %p1496_p1 }
 0x1f9   : > { %p1494_p12 = pneg %p1493_p13 }
 0x1fb   : > { %p1499_p0 = pnand %p1498_p8, %p1494_p12 }
 0x1fd   : > { %1502 = shalt.err (!%p1499_p0)
}
 0x1fe   : > { %1228 = dma.vmem_to_hbm [thread:$0]  (%p1674_p9), %s952_s16, 128, %s949_s21, %s937_s10  }
 0x1ff PF: > { %s2337_s11 = sld [smem:[#allocation19_spill]] }
 0x200   : > { %s2339_s1 = sld [smem:[#allocation22_spill]] }
 0x205   : > { %s963_s3 = sand.u32 1, %s2337_s11  }
 0x206   : > { %p2340_p3 = scmp.ge.s32.totalorder %s2339_s1, 2  ;;  %s964_s26 = scalar_lea.sflag [#allocation4], %s963_s3 }
 0x208   : > { %p1250_p4 = pnand %p2340_p3, %p1681_p11 }
 0x20a   : > { %p1251_p5 = pneg %p1250_p4 }
 0x20c   : > { %1544 = dma.done.wait (%p1251_p5), %s964_s26, 128  }
 0x20d   : > { %1546 = vsyncadd (%p1251_p5), %s964_s26, 4294967168  ;;  %s31_s26 = sadd.s32 1, %s2339_s1   ;;  %s2341_s6 = sld [smem:[#allocation20_spill]] }
 0x20e   : > { %p28_p6 = scmp.ge.s32.totalorder %s31_s26, 4   ;;  %s2342_s23 = sld [smem:[#allocation25_spill]] }
 0x20f   : > { %s2343_s24 = sld [smem:[#allocation21_spill]]  ;;  %s2345_s21 = smov %s1553_s22 }
 0x210   : > { %s2344_s25 = sld [smem:[#allocation23_spill]]  ;;  %30 = sbr.rel (!%p28_p6) target bundleno = 17 (0x11), region = 150 }
 0x213   : > { %s2346_s22 = smov %s2341_s6 }
 0x215   :  { %969 = vsyncpa [#allocation3], 1 }
 0x216   :  { %971 = vsyncpa [#allocation3 + $0x1], 1 }
 0x217   :  { %972 = vsyncpa [#allocation6], 1 }
 0x218   :  { %974 = vsyncpa [#allocation6 + $0x1], 1 }
 0x219   :  { %975 = vsyncpa [#allocation9], 1 }
 0x21a   :  { %977 = vsyncpa [#allocation9 + $0x1], 1 }
 0x21b   :  { %978 = vsyncpa [#allocation12], 1 }
 0x21c   :  { %980 = vsyncpa [#allocation12 + $0x1], 1 }
 0x21d   :  { %981 = vsyncpa [#allocation4], 1 }
 0x21e   :  { %983 = vsyncpa [#allocation4 + $0x1], 1 }

</bundles_post_ra>
